<compile_context>
chip_gen: v6e
topology: v6e:2x2x1
jax: 0.10.0
libtpu: 0.0.40
codegen_flags: <defaults>
</compile_context>

<pallas_src>
import functools

import jax
import jax.numpy as jnp
from jax.experimental import pallas as pl
from jax.experimental.pallas import tpu as pltpu


def _rcab_kernel(mask_ref, x_ref, B1_ref, b1_ref, B2_ref, b2_ref,
                 wd_ref, bd_ref, wu_ref, bu_ref, o_ref,
                 *, Nb, RPS, Hp, W, C, K, inv_count):
    p = K // 2
    WC = W * C
    R = Nb * RPS

    mask = mask_ref[...]                  # (R, 1) f32: 1 on valid (d, h) rows
    x_f32 = x_ref[...]                    # (R, WC) f32; D/H halo rows are zero
    xb = x_f32.astype(jnp.bfloat16)

    def conv3d(lhs_bf16, B_ref):
        # SAME 3-D conv: kw (+ zero padding along W) is folded into the banded
        # lane weights, the kd/kh taps become static sublane rolls of the MXU
        # result, so every matmul runs on the full contiguous (R, WC) block.
        acc = jnp.zeros((R, WC), jnp.float32)
        for kd in range(K):
            for kh in range(K):
                y = jnp.dot(lhs_bf16, B_ref[kd, kh],
                            preferred_element_type=jnp.float32)
                s = (kd - p) * Hp + (kh - p)
                if s != 0:
                    # rolled[r] = y[r + s]; wrap only pollutes invalid rows.
                    y = pltpu.roll(y, shift=(-s) % R, axis=0)
                acc = acc + y
        return acc

    # conv1 + ReLU; zero the halo rows so conv2 sees proper SAME zero padding.
    h1 = jnp.maximum(conv3d(xb, B1_ref) + b1_ref[...], 0.0) * mask
    # conv2
    h2 = conv3d(h1.astype(jnp.bfloat16), B2_ref) + b2_ref[...]       # (R, WC) f32

    # ---- CALayer2: per-sample global avg pool -> 1x1 convs -> sigmoid --------
    h2m = h2 * mask
    if Nb == 1:
        h2sum = jnp.sum(h2m, axis=0, keepdims=True)                  # (1, WC)
    else:
        h2sum = jnp.sum(h2m.reshape(Nb, RPS, WC), axis=1)            # (Nb, WC)
    y = h2sum[:, 0:C]
    for w in range(1, W):                                            # fold W lane groups
        y = y + h2sum[:, w * C:(w + 1) * C]                          # (Nb, C)
    y = y * inv_count                                                # mean over D*H*W
    z = jnp.maximum(
        jnp.dot(y, wd_ref[...], preferred_element_type=jnp.float32) + bd_ref[...],
        0.0)
    g = jax.nn.sigmoid(
        jnp.dot(z, wu_ref[...], preferred_element_type=jnp.float32) + bu_ref[...])
    g_wc = jnp.tile(g, (1, W))                                       # (Nb, WC)
    if Nb == 1:
        g_rows = g_wc                                                # row-broadcast
    else:
        g_rows = jnp.broadcast_to(g_wc[:, None, :], (Nb, RPS, WC)).reshape(R, WC)

    # ---- channel scaling + f32 residual ---------------------------------------
    # (halo rows carry garbage; the host slices them off after the call)
    o_ref[...] = h2 * g_rows + x_f32


def _banded_weight(w, W):
    """w: (K, K, K, Cin, Cout) -> (K, K, W*Cin, W*Cout) banded lane weights.

    B[kd, kh][w_in*Cin + ci, w_out*Cout + co] = w[kd, kh, kw, ci, co] for
    w_in = w_out + kw - K//2; taps falling outside [0, W) are dropped, which
    bakes the SAME zero padding along W into the weight (lane axis stays W*C).
    """
    K = w.shape[0]
    Cin, Cout = w.shape[3], w.shape[4]
    p = K // 2
    wo = jnp.arange(W)[:, None, None]                 # w_out
    wi = jnp.arange(W)[None, :, None]                 # w_in
    kw = jnp.arange(K)[None, None, :]
    sel = (wi == wo + kw - p).astype(w.dtype)         # (W_out, W_in, K)
    B = jnp.einsum('owk,abkic->abwioc', sel, w)       # (K, K, W_in, Cin, W_out, Cout)
    return B.reshape(K, K, W * Cin, W * Cout)


def _pick_batch_block(n, rows_per_sample, lane_width, target_rows=256,
                      vmem_budget_bytes=20 * 1024 * 1024):
    """Pick Nb (divisor of n): grow the matmul M toward target_rows, stay within
    a VMEM budget, and keep >= 2 grid steps (v7x megacore) whenever n >= 2.
    On v5e, target_rows=128 is already enough (4x128x128 MXU)."""
    best = 1
    for nb in range(1, n + 1):
        if n % nb:
            continue
        if n >= 2 and n // nb < 2:
            continue
        rows = nb * rows_per_sample
        act_bytes = rows * lane_width * 4 * 6     # in/out blocks (2-buffered) + temps
        if act_bytes > vmem_budget_bytes:
            continue
        best = nb
        if rows >= target_rows:
            break
    return best


def rcab_forward(x_ncdhw, params, kernel_size=3, target_rows=256):
    """x_ncdhw: (N, C, D, H, W) float32; returns same shape (PyTorch NCDHW)."""
    w1, b1, w2, b2, wd, bd, wu, bu = params
    K = kernel_size
    p = K // 2
    N, C, D, H, W = x_ncdhw.shape
    Cr = wd.shape[1]
    Dp, Hp = D + 2 * p, H + 2 * p
    WC = W * C
    rows_valid = Dp * Hp
    RPS = ((rows_valid + 7) // 8) * 8             # per-sample rows, sublane aligned

    Nb = _pick_batch_block(N, RPS, WC, target_rows=target_rows)
    G = N // Nb
    R = Nb * RPS

    # ---- host-side layout prep: channels-last, D/H halo, flat rows, f32 ------
    x = jnp.transpose(x_ncdhw, (0, 2, 3, 4, 1)).astype(jnp.float32)   # (N,D,H,W,C)
    xp = jnp.pad(x, ((0, 0), (p, p), (p, p), (0, 0), (0, 0)))
    xp = xp.reshape(N, rows_valid, WC)
    if RPS != rows_valid:
        xp = jnp.pad(xp, ((0, 0), (0, RPS - rows_valid), (0, 0)))
    x_flat = xp.reshape(N * RPS, WC)
    # TODO(synk): when chaining RCABs, keep activations in this flat padded
    # layout between blocks to avoid the transpose/pad/slice HBM passes.

    # valid-(d, h)-row mask (identical for every grid step)
    rr = jnp.arange(rows_valid)
    dd, hh = rr // Hp, rr % Hp
    m = ((dd >= p) & (dd < p + D) & (hh >= p) & (hh < p + H)).astype(jnp.float32)
    m = jnp.pad(m, (0, RPS - rows_valid))
    mask = jnp.tile(m, (Nb,)).reshape(R, 1)

    # banded conv weights (kw + W zero padding folded in), bf16 MXU operands
    B1 = _banded_weight(w1, W).astype(jnp.bfloat16)      # (K, K, WC, WC)
    B2 = _banded_weight(w2, W).astype(jnp.bfloat16)      # (K, K, WC, WC)
    b1w = jnp.tile(b1, W).reshape(1, WC).astype(jnp.float32)
    b2w = jnp.tile(b2, W).reshape(1, WC).astype(jnp.float32)
    wd_f = wd.astype(jnp.float32)
    wu_f = wu.astype(jnp.float32)
    bd2 = bd.reshape(1, Cr).astype(jnp.float32)
    bu2 = bu.reshape(1, C).astype(jnp.float32)
    # TODO(synk): banded weights grow as (W*C)^2; add a W-tiling fallback before
    # they approach the v7x 64 MiB VMEM budget.

    def const_spec(a):
        nd = a.ndim
        return pl.BlockSpec(a.shape, lambda i, _nd=nd: (0,) * _nd)
    # TODO(synk): pin the grid-invariant operands above to a single VMEM buffer
    # (pl.Buffered(1) / one-shot DMA into scratch) once single-buffering is
    # verified on the target toolchain; default pipelining double-buffers them.

    weight_bytes = sum(int(a.size) * a.dtype.itemsize
                       for a in (B1, B2, b1w, b2w, wd_f, wu_f, bd2, bu2, mask))
    act_bytes = R * WC * 4
    vmem_limit = int(min(max(2 * weight_bytes + 6 * act_bytes + (8 << 20),
                             32 << 20), 64 << 20))

    kern = functools.partial(_rcab_kernel, Nb=Nb, RPS=RPS, Hp=Hp, W=W, C=C, K=K,
                             inv_count=1.0 / float(D * H * W))

    out_flat = pl.pallas_call(
        kern,
        out_shape=jax.ShapeDtypeStruct((N * RPS, WC), jnp.float32),
        grid_spec=pltpu.PrefetchScalarGridSpec(
            num_scalar_prefetch=0,
            grid=(G,),
            in_specs=[
                const_spec(mask),
                pl.BlockSpec((R, WC), lambda i: (i, 0)),
                const_spec(B1), const_spec(b1w),
                const_spec(B2), const_spec(b2w),
                const_spec(wd_f), const_spec(bd2),
                const_spec(wu_f), const_spec(bu2),
            ],
            out_specs=pl.BlockSpec((R, WC), lambda i: (i, 0)),
        ),
        compiler_params=pltpu.CompilerParams(
            dimension_semantics=("parallel",),
            vmem_limit_bytes=vmem_limit),
    )(mask, x_flat, B1, b1w, B2, b2w, wd_f, bd2, wu_f, bu2)

    # drop halo rows, back to NCDHW
    out = out_flat.reshape(N, RPS, WC)[:, :rows_valid, :]
    out = out.reshape(N, Dp, Hp, W, C)[:, p:p + D, p:p + H]
    return jnp.transpose(out, (0, 4, 1, 2, 3))


def rcab_reference(x_ncdhw, params, kernel_size=3):
    """Pure-JAX f32 reference with identical math (tap-sum conv3d)."""
    w1, b1, w2, b2, wd, bd, wu, bu = params
    K = kernel_size
    p = K // 2
    x = jnp.transpose(x_ncdhw, (0, 2, 3, 4, 1)).astype(jnp.float32)

    def conv3d(v, w, b):
        n, d_, h_, w_, _ = v.shape
        vp = jnp.pad(v, ((0, 0), (p, p), (p, p), (p, p), (0, 0)))
        out = jnp.zeros((n, d_, h_, w_, w.shape[-1]), jnp.float32)
        for kd in range(K):
            for kh in range(K):
                for kw in range(K):
                    out = out + jnp.einsum(
                        'ndhwc,cf->ndhwf',
                        vp[:, kd:kd + d_, kh:kh + h_, kw:kw + w_, :], w[kd, kh, kw])
        return out + b

    h1 = jax.nn.relu(conv3d(x, w1, b1))
    h2 = conv3d(h1, w2, b2)
    y = jnp.mean(h2, axis=(1, 2, 3))                                  # (N, C)
    z = jax.nn.relu(y @ wd + bd)
    s = jax.nn.sigmoid(z @ wu + bu)
    out = h2 * s[:, None, None, None, :] + x
    return jnp.transpose(out, (0, 4, 1, 2, 3))


if __name__ == "__main__":
    # n_feat=16, kernel_size=3, reduction=4, volume 4x8x8, batch 2.
    # W * C = 128, so every activation tile is exactly one lane-tile wide.
    N, C, D, H, W = 2, 16, 4, 8, 8
    K, reduction = 3, 4
    Cr = C // reduction

    key = jax.random.PRNGKey(0)
    ks = jax.random.split(key, 9)
    x = jax.random.normal(ks[0], (N, C, D, H, W), jnp.float32)

    # Deterministic synthetic parameters (shapes from the module __init__).
    w1 = jax.random.normal(ks[1], (K, K, K, C, C), jnp.float32) * 0.05
    b1 = jax.random.normal(ks[2], (C,), jnp.float32) * 0.05
    w2 = jax.random.normal(ks[3], (K, K, K, C, C), jnp.float32) * 0.05
    b2 = jax.random.normal(ks[4], (C,), jnp.float32) * 0.05
    wd = jax.random.normal(ks[5], (C, Cr), jnp.float32) * 0.1   # conv_du[0] (1x1)
    bd = jax.random.normal(ks[6], (Cr,), jnp.float32) * 0.1
    wu = jax.random.normal(ks[7], (Cr, C), jnp.float32) * 0.1   # conv_du[2] (1x1)
    bu = jax.random.normal(ks[8], (C,), jnp.float32) * 0.1
    params = (w1, b1, w2, b2, wd, bd, wu, bu)

    out = jax.block_until_ready(rcab_forward(x, params, kernel_size=K))
    ref = rcab_reference(x, params, kernel_size=K)

    assert out.shape == x.shape, (out.shape, x.shape)
    # bf16 conv operands (f32 accumulation, f32 residual) vs f32 reference.
    max_err = float(jnp.max(jnp.abs(out - ref)))
    assert jnp.allclose(out, ref, atol=7.5e-2, rtol=5e-2), f"max_err={max_err}"
    print("KERNEL_OK")
</pallas_src>

<mosaic_0001>
module attributes {stable_mosaic.version = 11 : i64} {
  func.func @_rcab_kernel(%arg0: i32, %arg1: memref<64x1xf32, #tpu.memory_space<vmem>>, %arg2: memref<64x128xf32, #tpu.memory_space<vmem>>, %arg3: memref<3x3x128x128xbf16, #tpu.memory_space<vmem>>, %arg4: memref<1x128xf32, #tpu.memory_space<vmem>>, %arg5: memref<3x3x128x128xbf16, #tpu.memory_space<vmem>>, %arg6: memref<1x128xf32, #tpu.memory_space<vmem>>, %arg7: memref<16x4xf32, #tpu.memory_space<vmem>>, %arg8: memref<1x4xf32, #tpu.memory_space<vmem>>, %arg9: memref<4x16xf32, #tpu.memory_space<vmem>>, %arg10: memref<1x16xf32, #tpu.memory_space<vmem>>, %arg11: memref<64x128xf32, #tpu.memory_space<vmem>>) attributes {dimension_semantics = [#tpu.dimension_semantics<parallel>], iteration_bounds = array<i64: 2>, scalar_prefetch = 0 : i64, scratch_operands = 0 : i64, tpu.core_type = #tpu.core_type<tc>, window_params = [{pipeline_mode = #tpu.pipeline_mode<synchronous>, transform_indices = @transform_0, window_bounds = array<i64: 64, 1>}, {transform_indices = @transform_1, window_bounds = array<i64: 64, 128>}, {pipeline_mode = #tpu.pipeline_mode<synchronous>, transform_indices = @transform_2, window_bounds = array<i64: 3, 3, 128, 128>}, {pipeline_mode = #tpu.pipeline_mode<synchronous>, transform_indices = @transform_3, window_bounds = array<i64: 1, 128>}, {pipeline_mode = #tpu.pipeline_mode<synchronous>, transform_indices = @transform_4, window_bounds = array<i64: 3, 3, 128, 128>}, {pipeline_mode = #tpu.pipeline_mode<synchronous>, transform_indices = @transform_5, window_bounds = array<i64: 1, 128>}, {pipeline_mode = #tpu.pipeline_mode<synchronous>, transform_indices = @transform_6, window_bounds = array<i64: 16, 4>}, {pipeline_mode = #tpu.pipeline_mode<synchronous>, transform_indices = @transform_7, window_bounds = array<i64: 1, 4>}, {pipeline_mode = #tpu.pipeline_mode<synchronous>, transform_indices = @transform_8, window_bounds = array<i64: 4, 16>}, {pipeline_mode = #tpu.pipeline_mode<synchronous>, transform_indices = @transform_9, window_bounds = array<i64: 1, 16>}, {transform_indices = @transform_10, window_bounds = array<i64: 64, 128>}]} {
    %c0 = arith.constant 0 : index
    %c0_0 = arith.constant 0 : index
    %0 = vector.load %arg1[%c0, %c0_0] : memref<64x1xf32, #tpu.memory_space<vmem>>, vector<64x1xf32>
    %c0_1 = arith.constant 0 : index
    %c0_2 = arith.constant 0 : index
    %1 = vector.load %arg2[%c0_1, %c0_2] : memref<64x128xf32, #tpu.memory_space<vmem>>, vector<64x128xf32>
    %2 = arith.truncf %1 : vector<64x128xf32> to vector<64x128xbf16>
    %cst = arith.constant 0.000000e+00 : f32
    %3 = vector.broadcast %cst : f32 to vector<64x128xf32>
    %c0_3 = arith.constant 0 : index
    %c0_4 = arith.constant 0 : index
    %c0_5 = arith.constant 0 : index
    %c0_6 = arith.constant 0 : index
    %4 = vector.load %arg3[%c0_3, %c0_4, %c0_5, %c0_6] : memref<3x3x128x128xbf16, #tpu.memory_space<vmem>>, vector<1x1x128x128xbf16>
    %5 = vector.shape_cast %4 : vector<1x1x128x128xbf16> to vector<128x128xbf16>
    %cst_7 = arith.constant dense<0.000000e+00> : vector<64x128xf32>
    %6 = tpu.matmul %2, %5, %cst_7 {dimension_numbers = #tpu.dot_dimension_numbers<[1], [0], [0], [1], [0, 0, 1, 1], [], []>} : vector<64x128xbf16>, vector<128x128xbf16>, vector<64x128xf32> -> vector<64x128xf32>
    %c11_i32 = arith.constant 11 : i32
    %7 = tpu.dynamic_rotate %6 by %c11_i32 dim 0 : vector<64x128xf32>, i32 -> vector<64x128xf32>
    %8 = arith.addf %3, %7 : vector<64x128xf32>
    %c0_8 = arith.constant 0 : index
    %c1 = arith.constant 1 : index
    %c0_9 = arith.constant 0 : index
    %c0_10 = arith.constant 0 : index
    %9 = vector.load %arg3[%c0_8, %c1, %c0_9, %c0_10] : memref<3x3x128x128xbf16, #tpu.memory_space<vmem>>, vector<1x1x128x128xbf16>
    %10 = vector.shape_cast %9 : vector<1x1x128x128xbf16> to vector<128x128xbf16>
    %cst_11 = arith.constant dense<0.000000e+00> : vector<64x128xf32>
    %11 = tpu.matmul %2, %10, %cst_11 {dimension_numbers = #tpu.dot_dimension_numbers<[1], [0], [0], [1], [0, 0, 1, 1], [], []>} : vector<64x128xbf16>, vector<128x128xbf16>, vector<64x128xf32> -> vector<64x128xf32>
    %c10_i32 = arith.constant 10 : i32
    %12 = tpu.dynamic_rotate %11 by %c10_i32 dim 0 : vector<64x128xf32>, i32 -> vector<64x128xf32>
    %13 = arith.addf %8, %12 : vector<64x128xf32>
    %c0_12 = arith.constant 0 : index
    %c2 = arith.constant 2 : index
    %c0_13 = arith.constant 0 : index
    %c0_14 = arith.constant 0 : index
    %14 = vector.load %arg3[%c0_12, %c2, %c0_13, %c0_14] : memref<3x3x128x128xbf16, #tpu.memory_space<vmem>>, vector<1x1x128x128xbf16>
    %15 = vector.shape_cast %14 : vector<1x1x128x128xbf16> to vector<128x128xbf16>
    %cst_15 = arith.constant dense<0.000000e+00> : vector<64x128xf32>
    %16 = tpu.matmul %2, %15, %cst_15 {dimension_numbers = #tpu.dot_dimension_numbers<[1], [0], [0], [1], [0, 0, 1, 1], [], []>} : vector<64x128xbf16>, vector<128x128xbf16>, vector<64x128xf32> -> vector<64x128xf32>
    %c9_i32 = arith.constant 9 : i32
    %17 = tpu.dynamic_rotate %16 by %c9_i32 dim 0 : vector<64x128xf32>, i32 -> vector<64x128xf32>
    %18 = arith.addf %13, %17 : vector<64x128xf32>
    %c1_16 = arith.constant 1 : index
    %c0_17 = arith.constant 0 : index
    %c0_18 = arith.constant 0 : index
    %c0_19 = arith.constant 0 : index
    %19 = vector.load %arg3[%c1_16, %c0_17, %c0_18, %c0_19] : memref<3x3x128x128xbf16, #tpu.memory_space<vmem>>, vector<1x1x128x128xbf16>
    %20 = vector.shape_cast %19 : vector<1x1x128x128xbf16> to vector<128x128xbf16>
    %cst_20 = arith.constant dense<0.000000e+00> : vector<64x128xf32>
    %21 = tpu.matmul %2, %20, %cst_20 {dimension_numbers = #tpu.dot_dimension_numbers<[1], [0], [0], [1], [0, 0, 1, 1], [], []>} : vector<64x128xbf16>, vector<128x128xbf16>, vector<64x128xf32> -> vector<64x128xf32>
    %c1_i32 = arith.constant 1 : i32
    %22 = tpu.dynamic_rotate %21 by %c1_i32 dim 0 : vector<64x128xf32>, i32 -> vector<64x128xf32>
    %23 = arith.addf %18, %22 : vector<64x128xf32>
    %c1_21 = arith.constant 1 : index
    %c1_22 = arith.constant 1 : index
    %c0_23 = arith.constant 0 : index
    %c0_24 = arith.constant 0 : index
    %24 = vector.load %arg3[%c1_21, %c1_22, %c0_23, %c0_24] : memref<3x3x128x128xbf16, #tpu.memory_space<vmem>>, vector<1x1x128x128xbf16>
    %25 = vector.shape_cast %24 : vector<1x1x128x128xbf16> to vector<128x128xbf16>
    %cst_25 = arith.constant dense<0.000000e+00> : vector<64x128xf32>
    %26 = tpu.matmul %2, %25, %cst_25 {dimension_numbers = #tpu.dot_dimension_numbers<[1], [0], [0], [1], [0, 0, 1, 1], [], []>} : vector<64x128xbf16>, vector<128x128xbf16>, vector<64x128xf32> -> vector<64x128xf32>
    %27 = arith.addf %23, %26 : vector<64x128xf32>
    %c1_26 = arith.constant 1 : index
    %c2_27 = arith.constant 2 : index
    %c0_28 = arith.constant 0 : index
    %c0_29 = arith.constant 0 : index
    %28 = vector.load %arg3[%c1_26, %c2_27, %c0_28, %c0_29] : memref<3x3x128x128xbf16, #tpu.memory_space<vmem>>, vector<1x1x128x128xbf16>
    %29 = vector.shape_cast %28 : vector<1x1x128x128xbf16> to vector<128x128xbf16>
    %cst_30 = arith.constant dense<0.000000e+00> : vector<64x128xf32>
    %30 = tpu.matmul %2, %29, %cst_30 {dimension_numbers = #tpu.dot_dimension_numbers<[1], [0], [0], [1], [0, 0, 1, 1], [], []>} : vector<64x128xbf16>, vector<128x128xbf16>, vector<64x128xf32> -> vector<64x128xf32>
    %c63_i32 = arith.constant 63 : i32
    %31 = tpu.dynamic_rotate %30 by %c63_i32 dim 0 : vector<64x128xf32>, i32 -> vector<64x128xf32>
    %32 = arith.addf %27, %31 : vector<64x128xf32>
    %c2_31 = arith.constant 2 : index
    %c0_32 = arith.constant 0 : index
    %c0_33 = arith.constant 0 : index
    %c0_34 = arith.constant 0 : index
    %33 = vector.load %arg3[%c2_31, %c0_32, %c0_33, %c0_34] : memref<3x3x128x128xbf16, #tpu.memory_space<vmem>>, vector<1x1x128x128xbf16>
    %34 = vector.shape_cast %33 : vector<1x1x128x128xbf16> to vector<128x128xbf16>
    %cst_35 = arith.constant dense<0.000000e+00> : vector<64x128xf32>
    %35 = tpu.matmul %2, %34, %cst_35 {dimension_numbers = #tpu.dot_dimension_numbers<[1], [0], [0], [1], [0, 0, 1, 1], [], []>} : vector<64x128xbf16>, vector<128x128xbf16>, vector<64x128xf32> -> vector<64x128xf32>
    %c55_i32 = arith.constant 55 : i32
    %36 = tpu.dynamic_rotate %35 by %c55_i32 dim 0 : vector<64x128xf32>, i32 -> vector<64x128xf32>
    %37 = arith.addf %32, %36 : vector<64x128xf32>
    %c2_36 = arith.constant 2 : index
    %c1_37 = arith.constant 1 : index
    %c0_38 = arith.constant 0 : index
    %c0_39 = arith.constant 0 : index
    %38 = vector.load %arg3[%c2_36, %c1_37, %c0_38, %c0_39] : memref<3x3x128x128xbf16, #tpu.memory_space<vmem>>, vector<1x1x128x128xbf16>
    %39 = vector.shape_cast %38 : vector<1x1x128x128xbf16> to vector<128x128xbf16>
    %cst_40 = arith.constant dense<0.000000e+00> : vector<64x128xf32>
    %40 = tpu.matmul %2, %39, %cst_40 {dimension_numbers = #tpu.dot_dimension_numbers<[1], [0], [0], [1], [0, 0, 1, 1], [], []>} : vector<64x128xbf16>, vector<128x128xbf16>, vector<64x128xf32> -> vector<64x128xf32>
    %c54_i32 = arith.constant 54 : i32
    %41 = tpu.dynamic_rotate %40 by %c54_i32 dim 0 : vector<64x128xf32>, i32 -> vector<64x128xf32>
    %42 = arith.addf %37, %41 : vector<64x128xf32>
    %c2_41 = arith.constant 2 : index
    %c2_42 = arith.constant 2 : index
    %c0_43 = arith.constant 0 : index
    %c0_44 = arith.constant 0 : index
    %43 = vector.load %arg3[%c2_41, %c2_42, %c0_43, %c0_44] : memref<3x3x128x128xbf16, #tpu.memory_space<vmem>>, vector<1x1x128x128xbf16>
    %44 = vector.shape_cast %43 : vector<1x1x128x128xbf16> to vector<128x128xbf16>
    %cst_45 = arith.constant dense<0.000000e+00> : vector<64x128xf32>
    %45 = tpu.matmul %2, %44, %cst_45 {dimension_numbers = #tpu.dot_dimension_numbers<[1], [0], [0], [1], [0, 0, 1, 1], [], []>} : vector<64x128xbf16>, vector<128x128xbf16>, vector<64x128xf32> -> vector<64x128xf32>
    %c53_i32 = arith.constant 53 : i32
    %46 = tpu.dynamic_rotate %45 by %c53_i32 dim 0 : vector<64x128xf32>, i32 -> vector<64x128xf32>
    %47 = arith.addf %42, %46 : vector<64x128xf32>
    %c0_46 = arith.constant 0 : index
    %c0_47 = arith.constant 0 : index
    %48 = vector.load %arg4[%c0_46, %c0_47] : memref<1x128xf32, #tpu.memory_space<vmem>>, vector<1x128xf32>
    %49 = vector.broadcast %48 : vector<1x128xf32> to vector<64x128xf32>
    %50 = arith.addf %47, %49 : vector<64x128xf32>
    %cst_48 = arith.constant 0.000000e+00 : f32
    %51 = vector.broadcast %cst_48 : f32 to vector<64x128xf32>
    %52 = arith.maximumf %50, %51 : vector<64x128xf32>
    %53 = vector.broadcast %0 : vector<64x1xf32> to vector<64x128xf32>
    %54 = arith.mulf %52, %53 : vector<64x128xf32>
    %55 = arith.truncf %54 : vector<64x128xf32> to vector<64x128xbf16>
    %cst_49 = arith.constant 0.000000e+00 : f32
    %56 = vector.broadcast %cst_49 : f32 to vector<64x128xf32>
    %c0_50 = arith.constant 0 : index
    %c0_51 = arith.constant 0 : index
    %c0_52 = arith.constant 0 : index
    %c0_53 = arith.constant 0 : index
    %57 = vector.load %arg5[%c0_50, %c0_51, %c0_52, %c0_53] : memref<3x3x128x128xbf16, #tpu.memory_space<vmem>>, vector<1x1x128x128xbf16>
    %58 = vector.shape_cast %57 : vector<1x1x128x128xbf16> to vector<128x128xbf16>
    %cst_54 = arith.constant dense<0.000000e+00> : vector<64x128xf32>
    %59 = tpu.matmul %55, %58, %cst_54 {dimension_numbers = #tpu.dot_dimension_numbers<[1], [0], [0], [1], [0, 0, 1, 1], [], []>} : vector<64x128xbf16>, vector<128x128xbf16>, vector<64x128xf32> -> vector<64x128xf32>
    %c11_i32_55 = arith.constant 11 : i32
    %60 = tpu.dynamic_rotate %59 by %c11_i32_55 dim 0 : vector<64x128xf32>, i32 -> vector<64x128xf32>
    %61 = arith.addf %56, %60 : vector<64x128xf32>
    %c0_56 = arith.constant 0 : index
    %c1_57 = arith.constant 1 : index
    %c0_58 = arith.constant 0 : index
    %c0_59 = arith.constant 0 : index
    %62 = vector.load %arg5[%c0_56, %c1_57, %c0_58, %c0_59] : memref<3x3x128x128xbf16, #tpu.memory_space<vmem>>, vector<1x1x128x128xbf16>
    %63 = vector.shape_cast %62 : vector<1x1x128x128xbf16> to vector<128x128xbf16>
    %cst_60 = arith.constant dense<0.000000e+00> : vector<64x128xf32>
    %64 = tpu.matmul %55, %63, %cst_60 {dimension_numbers = #tpu.dot_dimension_numbers<[1], [0], [0], [1], [0, 0, 1, 1], [], []>} : vector<64x128xbf16>, vector<128x128xbf16>, vector<64x128xf32> -> vector<64x128xf32>
    %c10_i32_61 = arith.constant 10 : i32
    %65 = tpu.dynamic_rotate %64 by %c10_i32_61 dim 0 : vector<64x128xf32>, i32 -> vector<64x128xf32>
    %66 = arith.addf %61, %65 : vector<64x128xf32>
    %c0_62 = arith.constant 0 : index
    %c2_63 = arith.constant 2 : index
    %c0_64 = arith.constant 0 : index
    %c0_65 = arith.constant 0 : index
    %67 = vector.load %arg5[%c0_62, %c2_63, %c0_64, %c0_65] : memref<3x3x128x128xbf16, #tpu.memory_space<vmem>>, vector<1x1x128x128xbf16>
    %68 = vector.shape_cast %67 : vector<1x1x128x128xbf16> to vector<128x128xbf16>
    %cst_66 = arith.constant dense<0.000000e+00> : vector<64x128xf32>
    %69 = tpu.matmul %55, %68, %cst_66 {dimension_numbers = #tpu.dot_dimension_numbers<[1], [0], [0], [1], [0, 0, 1, 1], [], []>} : vector<64x128xbf16>, vector<128x128xbf16>, vector<64x128xf32> -> vector<64x128xf32>
    %c9_i32_67 = arith.constant 9 : i32
    %70 = tpu.dynamic_rotate %69 by %c9_i32_67 dim 0 : vector<64x128xf32>, i32 -> vector<64x128xf32>
    %71 = arith.addf %66, %70 : vector<64x128xf32>
    %c1_68 = arith.constant 1 : index
    %c0_69 = arith.constant 0 : index
    %c0_70 = arith.constant 0 : index
    %c0_71 = arith.constant 0 : index
    %72 = vector.load %arg5[%c1_68, %c0_69, %c0_70, %c0_71] : memref<3x3x128x128xbf16, #tpu.memory_space<vmem>>, vector<1x1x128x128xbf16>
    %73 = vector.shape_cast %72 : vector<1x1x128x128xbf16> to vector<128x128xbf16>
    %cst_72 = arith.constant dense<0.000000e+00> : vector<64x128xf32>
    %74 = tpu.matmul %55, %73, %cst_72 {dimension_numbers = #tpu.dot_dimension_numbers<[1], [0], [0], [1], [0, 0, 1, 1], [], []>} : vector<64x128xbf16>, vector<128x128xbf16>, vector<64x128xf32> -> vector<64x128xf32>
    %c1_i32_73 = arith.constant 1 : i32
    %75 = tpu.dynamic_rotate %74 by %c1_i32_73 dim 0 : vector<64x128xf32>, i32 -> vector<64x128xf32>
    %76 = arith.addf %71, %75 : vector<64x128xf32>
    %c1_74 = arith.constant 1 : index
    %c1_75 = arith.constant 1 : index
    %c0_76 = arith.constant 0 : index
    %c0_77 = arith.constant 0 : index
    %77 = vector.load %arg5[%c1_74, %c1_75, %c0_76, %c0_77] : memref<3x3x128x128xbf16, #tpu.memory_space<vmem>>, vector<1x1x128x128xbf16>
    %78 = vector.shape_cast %77 : vector<1x1x128x128xbf16> to vector<128x128xbf16>
    %cst_78 = arith.constant dense<0.000000e+00> : vector<64x128xf32>
    %79 = tpu.matmul %55, %78, %cst_78 {dimension_numbers = #tpu.dot_dimension_numbers<[1], [0], [0], [1], [0, 0, 1, 1], [], []>} : vector<64x128xbf16>, vector<128x128xbf16>, vector<64x128xf32> -> vector<64x128xf32>
    %80 = arith.addf %76, %79 : vector<64x128xf32>
    %c1_79 = arith.constant 1 : index
    %c2_80 = arith.constant 2 : index
    %c0_81 = arith.constant 0 : index
    %c0_82 = arith.constant 0 : index
    %81 = vector.load %arg5[%c1_79, %c2_80, %c0_81, %c0_82] : memref<3x3x128x128xbf16, #tpu.memory_space<vmem>>, vector<1x1x128x128xbf16>
    %82 = vector.shape_cast %81 : vector<1x1x128x128xbf16> to vector<128x128xbf16>
    %cst_83 = arith.constant dense<0.000000e+00> : vector<64x128xf32>
    %83 = tpu.matmul %55, %82, %cst_83 {dimension_numbers = #tpu.dot_dimension_numbers<[1], [0], [0], [1], [0, 0, 1, 1], [], []>} : vector<64x128xbf16>, vector<128x128xbf16>, vector<64x128xf32> -> vector<64x128xf32>
    %c63_i32_84 = arith.constant 63 : i32
    %84 = tpu.dynamic_rotate %83 by %c63_i32_84 dim 0 : vector<64x128xf32>, i32 -> vector<64x128xf32>
    %85 = arith.addf %80, %84 : vector<64x128xf32>
    %c2_85 = arith.constant 2 : index
    %c0_86 = arith.constant 0 : index
    %c0_87 = arith.constant 0 : index
    %c0_88 = arith.constant 0 : index
    %86 = vector.load %arg5[%c2_85, %c0_86, %c0_87, %c0_88] : memref<3x3x128x128xbf16, #tpu.memory_space<vmem>>, vector<1x1x128x128xbf16>
    %87 = vector.shape_cast %86 : vector<1x1x128x128xbf16> to vector<128x128xbf16>
    %cst_89 = arith.constant dense<0.000000e+00> : vector<64x128xf32>
    %88 = tpu.matmul %55, %87, %cst_89 {dimension_numbers = #tpu.dot_dimension_numbers<[1], [0], [0], [1], [0, 0, 1, 1], [], []>} : vector<64x128xbf16>, vector<128x128xbf16>, vector<64x128xf32> -> vector<64x128xf32>
    %c55_i32_90 = arith.constant 55 : i32
    %89 = tpu.dynamic_rotate %88 by %c55_i32_90 dim 0 : vector<64x128xf32>, i32 -> vector<64x128xf32>
    %90 = arith.addf %85, %89 : vector<64x128xf32>
    %c2_91 = arith.constant 2 : index
    %c1_92 = arith.constant 1 : index
    %c0_93 = arith.constant 0 : index
    %c0_94 = arith.constant 0 : index
    %91 = vector.load %arg5[%c2_91, %c1_92, %c0_93, %c0_94] : memref<3x3x128x128xbf16, #tpu.memory_space<vmem>>, vector<1x1x128x128xbf16>
    %92 = vector.shape_cast %91 : vector<1x1x128x128xbf16> to vector<128x128xbf16>
    %cst_95 = arith.constant dense<0.000000e+00> : vector<64x128xf32>
    %93 = tpu.matmul %55, %92, %cst_95 {dimension_numbers = #tpu.dot_dimension_numbers<[1], [0], [0], [1], [0, 0, 1, 1], [], []>} : vector<64x128xbf16>, vector<128x128xbf16>, vector<64x128xf32> -> vector<64x128xf32>
    %c54_i32_96 = arith.constant 54 : i32
    %94 = tpu.dynamic_rotate %93 by %c54_i32_96 dim 0 : vector<64x128xf32>, i32 -> vector<64x128xf32>
    %95 = arith.addf %90, %94 : vector<64x128xf32>
    %c2_97 = arith.constant 2 : index
    %c2_98 = arith.constant 2 : index
    %c0_99 = arith.constant 0 : index
    %c0_100 = arith.constant 0 : index
    %96 = vector.load %arg5[%c2_97, %c2_98, %c0_99, %c0_100] : memref<3x3x128x128xbf16, #tpu.memory_space<vmem>>, vector<1x1x128x128xbf16>
    %97 = vector.shape_cast %96 : vector<1x1x128x128xbf16> to vector<128x128xbf16>
    %cst_101 = arith.constant dense<0.000000e+00> : vector<64x128xf32>
    %98 = tpu.matmul %55, %97, %cst_101 {dimension_numbers = #tpu.dot_dimension_numbers<[1], [0], [0], [1], [0, 0, 1, 1], [], []>} : vector<64x128xbf16>, vector<128x128xbf16>, vector<64x128xf32> -> vector<64x128xf32>
    %c53_i32_102 = arith.constant 53 : i32
    %99 = tpu.dynamic_rotate %98 by %c53_i32_102 dim 0 : vector<64x128xf32>, i32 -> vector<64x128xf32>
    %100 = arith.addf %95, %99 : vector<64x128xf32>
    %c0_103 = arith.constant 0 : index
    %c0_104 = arith.constant 0 : index
    %101 = vector.load %arg6[%c0_103, %c0_104] : memref<1x128xf32, #tpu.memory_space<vmem>>, vector<1x128xf32>
    %102 = vector.broadcast %101 : vector<1x128xf32> to vector<64x128xf32>
    %103 = arith.addf %100, %102 : vector<64x128xf32>
    %104 = vector.broadcast %0 : vector<64x1xf32> to vector<64x128xf32>
    %105 = arith.mulf %103, %104 : vector<64x128xf32>
    %cst_105 = arith.constant dense<0.000000e+00> : vector<128xf32>
    %106 = vector.multi_reduction <add>, %105, %cst_105 [0] : vector<64x128xf32> to vector<128xf32>
    %107 = vector.shape_cast %106 : vector<128xf32> to vector<1x128xf32>
    %108 = vector.extract_strided_slice %107 {offsets = [0, 0], sizes = [1, 16], strides = [1, 1]} : vector<1x128xf32> to vector<1x16xf32>
    %109 = vector.extract_strided_slice %107 {offsets = [0, 16], sizes = [1, 16], strides = [1, 1]} : vector<1x128xf32> to vector<1x16xf32>
    %110 = arith.addf %108, %109 : vector<1x16xf32>
    %111 = vector.extract_strided_slice %107 {offsets = [0, 32], sizes = [1, 16], strides = [1, 1]} : vector<1x128xf32> to vector<1x16xf32>
    %112 = arith.addf %110, %111 : vector<1x16xf32>
    %113 = vector.extract_strided_slice %107 {offsets = [0, 48], sizes = [1, 16], strides = [1, 1]} : vector<1x128xf32> to vector<1x16xf32>
    %114 = arith.addf %112, %113 : vector<1x16xf32>
    %115 = vector.extract_strided_slice %107 {offsets = [0, 64], sizes = [1, 16], strides = [1, 1]} : vector<1x128xf32> to vector<1x16xf32>
    %116 = arith.addf %114, %115 : vector<1x16xf32>
    %117 = vector.extract_strided_slice %107 {offsets = [0, 80], sizes = [1, 16], strides = [1, 1]} : vector<1x128xf32> to vector<1x16xf32>
    %118 = arith.addf %116, %117 : vector<1x16xf32>
    %119 = vector.extract_strided_slice %107 {offsets = [0, 96], sizes = [1, 16], strides = [1, 1]} : vector<1x128xf32> to vector<1x16xf32>
    %120 = arith.addf %118, %119 : vector<1x16xf32>
    %121 = vector.extract_strided_slice %107 {offsets = [0, 112], sizes = [1, 16], strides = [1, 1]} : vector<1x128xf32> to vector<1x16xf32>
    %122 = arith.addf %120, %121 : vector<1x16xf32>
    %cst_106 = arith.constant 3.906250e-03 : f32
    %123 = vector.broadcast %cst_106 : f32 to vector<1x16xf32>
    %124 = arith.mulf %122, %123 : vector<1x16xf32>
    %c0_107 = arith.constant 0 : index
    %c0_108 = arith.constant 0 : index
    %125 = vector.load %arg7[%c0_107, %c0_108] : memref<16x4xf32, #tpu.memory_space<vmem>>, vector<16x4xf32>
    %cst_109 = arith.constant dense<0.000000e+00> : vector<1x4xf32>
    %126 = tpu.matmul %124, %125, %cst_109 {dimension_numbers = #tpu.dot_dimension_numbers<[1], [0], [0], [1], [0, 0, 1, 1], [], []>} : vector<1x16xf32>, vector<16x4xf32>, vector<1x4xf32> -> vector<1x4xf32>
    %c0_110 = arith.constant 0 : index
    %c0_111 = arith.constant 0 : index
    %127 = vector.load %arg8[%c0_110, %c0_111] : memref<1x4xf32, #tpu.memory_space<vmem>>, vector<1x4xf32>
    %128 = arith.addf %126, %127 : vector<1x4xf32>
    %cst_112 = arith.constant 0.000000e+00 : f32
    %129 = vector.broadcast %cst_112 : f32 to vector<1x4xf32>
    %130 = arith.maximumf %128, %129 : vector<1x4xf32>
    %c0_113 = arith.constant 0 : index
    %c0_114 = arith.constant 0 : index
    %131 = vector.load %arg9[%c0_113, %c0_114] : memref<4x16xf32, #tpu.memory_space<vmem>>, vector<4x16xf32>
    %cst_115 = arith.constant dense<0.000000e+00> : vector<1x16xf32>
    %132 = tpu.matmul %130, %131, %cst_115 {dimension_numbers = #tpu.dot_dimension_numbers<[1], [0], [0], [1], [0, 0, 1, 1], [], []>} : vector<1x4xf32>, vector<4x16xf32>, vector<1x16xf32> -> vector<1x16xf32>
    %c0_116 = arith.constant 0 : index
    %c0_117 = arith.constant 0 : index
    %133 = vector.load %arg10[%c0_116, %c0_117] : memref<1x16xf32, #tpu.memory_space<vmem>>, vector<1x16xf32>
    %134 = arith.addf %132, %133 : vector<1x16xf32>
    %135 = arith.negf %134 : vector<1x16xf32>
    %136 = math.exp %135 : vector<1x16xf32>
    %cst_118 = arith.constant 1.000000e+00 : f32
    %137 = vector.broadcast %cst_118 : f32 to vector<1x16xf32>
    %138 = arith.addf %137, %136 : vector<1x16xf32>
    %139 = arith.divf %137, %138 : vector<1x16xf32>
    %140 = tpu.concatenate %139, %139, %139, %139, %139, %139, %139, %139 in 1 : vector<1x16xf32>, vector<1x16xf32>, vector<1x16xf32>, vector<1x16xf32>, vector<1x16xf32>, vector<1x16xf32>, vector<1x16xf32>, vector<1x16xf32> -> vector<1x128xf32>
    %141 = vector.broadcast %140 : vector<1x128xf32> to vector<64x128xf32>
    %142 = arith.mulf %103, %141 : vector<64x128xf32>
    %143 = arith.addf %142, %1 : vector<64x128xf32>
    %c0_119 = arith.constant 0 : index
    %c0_120 = arith.constant 0 : index
    %144 = vector.load %arg11[%c0_119, %c0_120] : memref<64x128xf32, #tpu.memory_space<vmem>>, vector<64x128xf32>
    tpu.vector_store %arg11[%c0_119, %c0_120], %143 {strides = array<i32>} : memref<64x128xf32, #tpu.memory_space<vmem>>, vector<64x128xf32>,
    return
  }
  func.func @transform_0(%arg0: i32) -> (i32, i32) {
    %c0_i32 = arith.constant 0 : i32
    %c0_i32_0 = arith.constant 0 : i32
    %c0_i32_1 = arith.constant 0 : i32
    return %c0_i32, %c0_i32_0 : i32, i32
  }
  func.func @transform_1(%arg0: i32) -> (i32, i32) {
    %c0_i32 = arith.constant 0 : i32
    %c0_i32_0 = arith.constant 0 : i32
    return %arg0, %c0_i32 : i32, i32
  }
  func.func @transform_2(%arg0: i32) -> (i32, i32, i32, i32) {
    %c0_i32 = arith.constant 0 : i32
    %c0_i32_0 = arith.constant 0 : i32
    %c0_i32_1 = arith.constant 0 : i32
    %c0_i32_2 = arith.constant 0 : i32
    %c0_i32_3 = arith.constant 0 : i32
    return %c0_i32, %c0_i32_0, %c0_i32_1, %c0_i32_2 : i32, i32, i32, i32
  }
  func.func @transform_3(%arg0: i32) -> (i32, i32) {
    %c0_i32 = arith.constant 0 : i32
    %c0_i32_0 = arith.constant 0 : i32
    %c0_i32_1 = arith.constant 0 : i32
    return %c0_i32, %c0_i32_0 : i32, i32
  }
  func.func @transform_4(%arg0: i32) -> (i32, i32, i32, i32) {
    %c0_i32 = arith.constant 0 : i32
    %c0_i32_0 = arith.constant 0 : i32
    %c0_i32_1 = arith.constant 0 : i32
    %c0_i32_2 = arith.constant 0 : i32
    %c0_i32_3 = arith.constant 0 : i32
    return %c0_i32, %c0_i32_0, %c0_i32_1, %c0_i32_2 : i32, i32, i32, i32
  }
  func.func @transform_5(%arg0: i32) -> (i32, i32) {
    %c0_i32 = arith.constant 0 : i32
    %c0_i32_0 = arith.constant 0 : i32
    %c0_i32_1 = arith.constant 0 : i32
    return %c0_i32, %c0_i32_0 : i32, i32
  }
  func.func @transform_6(%arg0: i32) -> (i32, i32) {
    %c0_i32 = arith.constant 0 : i32
    %c0_i32_0 = arith.constant 0 : i32
    %c0_i32_1 = arith.constant 0 : i32
    return %c0_i32, %c0_i32_0 : i32, i32
  }
  func.func @transform_7(%arg0: i32) -> (i32, i32) {
    %c0_i32 = arith.constant 0 : i32
    %c0_i32_0 = arith.constant 0 : i32
    %c0_i32_1 = arith.constant 0 : i32
    return %c0_i32, %c0_i32_0 : i32, i32
  }
  func.func @transform_8(%arg0: i32) -> (i32, i32) {
    %c0_i32 = arith.constant 0 : i32
    %c0_i32_0 = arith.constant 0 : i32
    %c0_i32_1 = arith.constant 0 : i32
    return %c0_i32, %c0_i32_0 : i32, i32
  }
  func.func @transform_9(%arg0: i32) -> (i32, i32) {
    %c0_i32 = arith.constant 0 : i32
    %c0_i32_0 = arith.constant 0 : i32
    %c0_i32_1 = arith.constant 0 : i32
    return %c0_i32, %c0_i32_0 : i32, i32
  }
  func.func @transform_10(%arg0: i32) -> (i32, i32) {
    %c0_i32 = arith.constant 0 : i32
    %c0_i32_0 = arith.constant 0 : i32
    return %arg0, %c0_i32 : i32, i32
  }
}

</mosaic_0001>

<bundles_post_ra>
// kernel: tpu_custom_call.1
= control target key start
LH: loop header
LB: loop body
LE: loop exit
PB: predicated region body
PF: predicated region fallthrough
CT: control target
= control target key end

     0   :  { %s6047_s0 = inlined_call_operand.vmem [shape: f32[64,1], index: 0, kind: input, shape index: {}]   ;;  %s6048_s1 = inlined_call_operand.hbm [shape: f32[128,128], index: 1, kind: input, shape index: {}]   ;;  %s6049_s2 = inlined_call_operand.hbm [shape: bf16[3,3,128,128], index: 2, kind: input, shape index: {}]   ;;  %s6050_s3 = inlined_call_operand.vmem [shape: f32[1,128], index: 3, kind: input, shape index: {}]   ;;  %s6051_s4 = inlined_call_operand.hbm [shape: bf16[3,3,128,128], index: 4, kind: input, shape index: {}]   ;;  %s6052_s5 = inlined_call_operand.vmem [shape: f32[1,128], index: 5, kind: input, shape index: {}]   ;;  %s6053_s6 = inlined_call_operand.vmem [shape: f32[16,4], index: 6, kind: input, shape index: {}]   ;;  %s6054_s7 = inlined_call_operand.vmem [shape: f32[1,4], index: 7, kind: input, shape index: {}]   ;;  %s6055_s8 = inlined_call_operand.vmem [shape: f32[4,16], index: 8, kind: input, shape index: {}]   ;;  %s6056_s9 = inlined_call_operand.vmem [shape: f32[1,16], index: 9, kind: input, shape index: {}]   ;;  %s6057_s10 = inlined_call_operand.hbm [shape: f32[128,128], index: 10, kind: output, shape index: {}]  }
   0x1   :  { %6075 = sst [smem:[#allocation24_spill]] %s6049_s2 }
   0x2   :  { %6076 = sst [smem:[#allocation25_spill]] %s6051_s4 }
   0x3   :  { %15 = vsyncpa [#allocation3], 0 }
   0x4   :  { %17 = vsyncpa [#allocation3 + $0x1], 0 }
   0x5   :  { %18 = vsyncpa [#allocation6], 0 }
   0x6   :  { %19 = vsyncpa [#allocation4], 0 }
   0x7   :  { %21 = vsyncpa [#allocation4 + $0x1], 0  ;;  %s4951_s13 = smov 0   ;;  %s4953_s14 = smov 0  }
   0x8   :  { %s4955_s15 = smov 0   ;;  %s4957_s16 = smov 0  }
   0x9 LB: > { %6077 = sst [smem:[#allocation12_spill]] %s4870_s15  ;;  %s4972_s17 = sadd.s32 4294967295, %s4874_s16   ;;  %s4874_s16 = sphi %s4957_s16, %s6122_s16   ;;  %s4870_s15 = sphi %s4955_s15, %s6119_s15   ;;  %s4866_s14 = sphi %s4953_s14, %s6121_s14   ;;  %s4862_s13 = sphi %s4951_s13, %s6120_s13  }
   0xa   : > { %s3650_s18 = sadd.s32 4294967294, %s4874_s16   ;;  %p68_p0 = scmp.ne.s32.totalorder %s4866_s14, %s4862_s13 }
   0xb   : > { %p6058_p1 = scmp.eq.s32.totalorder %s4972_s17, 0  ;;  %p266_p3 = scmp.eq.s32.totalorder %s3650_s18, 1 }
   0xc   : > { %p3651_p5 = scmp.ge.s32.totalorder %s4874_s16, 1  ;;  %p273_p7 = scmp.lt.s32.totalorder %s4874_s16, 3 }
   0xd   : > { %p4981_p4 = por %p6058_p1, %p68_p0  ;;  %p4986_p6 = por %p266_p3, %p68_p0 }
   0xe   : > { %p4991_p8 = pnand %p3651_p5, %p273_p7  ;;  %s4876_s22 = smov [#allocation5]  }
   0xf   : > { %s6078_s19 = scalar_select %p4981_p4, 1, 0 }
  0x10   : > { %s6079_s20 = scalar_select %p4986_p6, 1, 0 }
  0x11   : > { %s6080_s21 = scalar_select %p4991_p8, 1, 0 }
  0x12   : > { %s288_s23 = sshll.u32 %s4876_s22, 4  ;;  %p4497_p9 = pneg %p4991_p8  ;;  %s289_s23 = int_to_ptr.vmem [resolvable:$true] %s288_s23 }
  0x13   : > { %s4877_s25 = smov [#allocation7]   ;;  %s4737_s27 = scalar_lea.vmem %s289_s23, 9216 }
  0x14   : > { %p5000_p11 = pnand %p4497_p9, %p6058_p1  ;;  %s304_s26 = sshll.u32 %s4877_s25, 4  ;;  %s305_s26 = int_to_ptr.vmem [resolvable:$true] %s304_s26 }
  0x15   : > { %p4738_p13 = scmp.ne.s32.totalorder %s289_s23, %s4737_s27  ;;  %p4745_p5 = scmp.lt.s32.totalorder %s289_s23, %s289_s23 }
  0x16   : > { %p4728_p12 = pneg %p5000_p11  ;;  %p4746_p7 = scmp.lt.s32.totalorder %s4737_s27, %s4737_s27 }
  0x18   : > { %p4740_p0 = pnand %p4738_p13, %p4728_p12  ;;  %p4747_p10 = por %p4746_p7, %p4745_p5 }
  0x1a   : > { %p4741_p3 = pneg %p4740_p0 }
  0x1c   : > { %p4748_p9 = pnand %p4747_p10, %p4741_p3 }
  0x1e   : > { %4751 = shalt.err (!%p4748_p9)
}
  0x1f   : > { %s4878_s28 = smov 64   ;;  %s4879_s29 = smov 4  }
  0x20   : > { %s6082_s2 = sld [smem:[#allocation24_spill]]  ;;  %s4763_s12 = scalar_lea.vmem %s305_s26, 9216 }
  0x21   : > { %p4764_p1 = scmp.ne.s32.totalorder %s305_s26, %s4763_s12  ;;  %p4771_p2 = scmp.lt.s32.totalorder %s305_s26, %s305_s26 }
  0x22   : > { %p4772_p6 = scmp.lt.s32.totalorder %s4763_s12, %s4763_s12 }
  0x23   : > { %p4766_p13 = pnand %p4764_p1, %p4728_p12 }
  0x24   : > { %p4773_p5 = por %p4772_p6, %p4771_p2 }
  0x25   : > { %p4767_p0 = pneg %p4766_p13 }
  0x26   : > { %4500 = dma.hbm_to_vmem [thread:$0]  (!%p5000_p11), %s6082_s2, 9216, %s289_s23, [#allocation6], %s4878_s28, %s4878_s28, %s4879_s29  }
  0x27   : > { %p4774_p10 = pnand %p4773_p5, %p4767_p0 }
  0x29   : > { %4777 = shalt.err (!%p4774_p10)
}
  0x2a   : > { %s6083_s4 = sld [smem:[#allocation25_spill]]  ;;  %s5023_s23 = sadd.s32 1, %s4874_s16  }
  0x2b   : > { %s55_s25 = sadd.s32 1, %s4870_s15  ;;  %s52_s24 = ssub.s32 %s4874_s16, %s5023_s23 }
  0x2c   : > { %p62_p1 = scmp.ne.s32.totalorder %s4870_s15, %s4866_s14  ;;  %p53_p2 = scmp.eq.s32.totalorder %s52_s24, 0 }
  0x2d   : > { %p63_p6 = scmp.eq.s32.totalorder %s4874_s16, 0  ;;  %p6084_p12 = scmp.eq.s32.totalorder %s4972_s17, 1 }
  0x2e   : > { %p4514_p7 = scmp.lt.s32.totalorder %s4874_s16, 2  ;;  %s333_s11 = sand.u32 1, %s4870_s15  }
  0x2f   : > { %p5033_p3 = por %p6084_p12, %p62_p1  ;;  %p64_p9 = por %p63_p6, %p62_p1 }
  0x30   : > { %4503 = dma.hbm_to_vmem [thread:$0]  (!%p5000_p11), %s6083_s4, 9216, %s305_s26, [#allocation6], %s4878_s28, %s4878_s28, %s4879_s29  }
  0x31   : > { %s6085_s27 = scalar_select %p5033_p3, 1, 0 }
  0x32   : > { %s5039_s30 = scalar_select %p53_p2, %s4870_s15, %s55_s25  }
  0x33   : > { %s3655_s12 = sshll.u32 %s333_s11, 6  ;;  %s3818_s26 = sshll.u32 %s4874_s16, 10 }
  0x34   : > { %6086 = sst [smem:[#allocation13_spill]] %s5039_s30  ;;  %s5046_s18 = scalar_lea.hbm %s6048_s1, %s3818_s26 }
  0x35   : > { %s337_s22 = scalar_lea.vmem [#allocation2], %s3655_s12  ;;  %p5050_p11 = pnand %p4514_p7, %p64_p9 }
  0x36   : > { %s344_s24 = sshll.u32 %s337_s22, 4  ;;  %s5054_s25 = scalar_lea.sflag [#allocation3], %s333_s11  ;;  %s5048_s24 = int_to_ptr.vmem [resolvable:$true] %s344_s24 }
  0x37   : > { %s4778_s4 = scalar_lea.hbm %s5046_s18, 1024  ;;  %p4780_p0 = pneg %p5050_p11 }
  0x38   : > { %p4779_p13 = scmp.ne.s32.totalorder %s5046_s18, %s4778_s4  ;;  %s4783_s12 = scalar_lea.hbm %s6048_s1, 2048 }
  0x39   : > { %p4784_p1 = scmp.lt.s32.totalorder %s5046_s18, %s6048_s1  ;;  %p4785_p2 = scmp.lt.s32.totalorder %s4783_s12, %s4778_s4 }
  0x3a   : > { %p4781_p5 = pnand %p4780_p0, %p4779_p13 }
  0x3b   : > { %p4786_p6 = por %p4785_p2, %p4784_p1 }
  0x3c   : > { %p4782_p10 = pneg %p4781_p5 }
  0x3e   : > { %p4787_p12 = pnand %p4786_p6, %p4782_p10 }
  0x40   : > { %4790 = shalt.err (!%p4787_p12)
}
  0x41   : > { %s4791_s11 = scalar_lea.vmem %s5048_s24, 1024  ;;  %s4880_s30 = smov [#allocation2]  }
  0x42   : > { %p4792_p7 = scmp.ne.s32.totalorder %s5048_s24, %s4791_s11  ;;  %s4796_s15 = sshll.u32 %s4880_s30, 4  ;;  %s4797_s15 = int_to_ptr.vmem [resolvable:$false] %s4796_s15 }
  0x43   : > { %s4798_s26 = scalar_lea.vmem %s4797_s15, 2048  ;;  %p4799_p5 = scmp.lt.s32.totalorder %s5048_s24, %s4797_s15 }
  0x44   : > { %p4794_p9 = pnand %p4792_p7, %p4780_p0  ;;  %p4800_p3 = scmp.lt.s32.totalorder %s4798_s26, %s4791_s11 }
  0x46   : > { %p4795_p13 = pneg %p4794_p9  ;;  %p4801_p4 = por %p4800_p3, %p4799_p5 }
  0x48   : > { %p4802_p8 = pnand %p4801_p4, %p4795_p13 }
  0x4a   : > { %4805 = shalt.err (!%p4802_p8)
}
  0x4b   : > { %s4881_s4 = smov 128   ;;  %s4882_s28 = smov 8  }
  0x4c   : > { %4507 = dma.hbm_to_vmem [thread:$0]  (!%p5050_p11), %s5046_s18, 1024, %s5048_s24, %s5054_s25, %s4881_s4, %s4881_s4, %s4882_s28  }
  0x4d   : > { %p6088_p0 = scmp.ne.s32.totalorder %s6080_s21, 0 }
  0x4f   : > { %356 = sbr.rel (%p6088_p0) target bundleno = 1547 (0x60b), region = 60 }
  0x54   : > { %s5078_s30 = sand.u32 1, %s4866_s14   ;;  %p6089_p4 = scmp.ne.s32.totalorder %s6078_s19, 0 }
  0x55   : > { %s3659_s15 = sshll.u32 %s5078_s30, 6  ;;  %s359_s12 = scalar_lea.sflag [#allocation3], %s5078_s30 }
  0x56   : > { %s5084_s29 = scalar_lea.vmem [#allocation2], %s3659_s15 }
  0x57   : > { %4849 = dma.done.wait (%p6089_p4), %s359_s12, 1024  }
  0x58   : > { %4851 = vsyncadd (%p6089_p4), %s359_s12, 4294966272  ;;  %p6090_p8 = scmp.eq.s32.totalorder %s4972_s17, 0 }
  0x5a   : > { %4853 = dma.done.wait (%p6090_p8), [#allocation6], 18432   ;;  %p6091_p3 = pmov %p6090_p8 }
  0x5b   : > { %v4570_v0 = vld [vmem:[#allocation5 + $0x38] sm:$0xff]   ;;  %v4572_v2 = vld [vmem:[#allocation5 + $0x30] sm:$0xff]   ;;  %v4574_v4 = vld [vmem:[#allocation5 + $0x28] sm:$0xff]   ;;  %s4885_s2 = smov 96   ;;  %s4886_s19 = smov 112   ;;  %vm4887_vm6 = vmmov 0  }
  0x5c   : > { %4855 = vsyncadd (%p6091_p3), [#allocation6], 4294948864  ;;  %v4571_v1 = vld [vmem:[#allocation5 + $0x78] sm:$0xff]   ;;  %4041 = vmatprep.subr.bf16.mxu0 %v4570_v0  ;;  %v4573_v3 = vld [vmem:[#allocation5 + $0x70] sm:$0xff]   ;;  %vm3401_vm7 = vcmask 1043456   ;;  %s4888_s24 = smov 64  }
  0x5d   : > { %4065 = vmatprep.subr.bf16.mxu1 %v4571_v1  ;;  %4042 = vmatpush3.bf16.msra.mxu0 %v4570_v0  ;;  %v4575_v5 = vld [vmem:[#allocation5 + $0x68] sm:$0xff]   ;;  %v4576_v6 = vld [vmem:[#allocation5 + $0x20] sm:$0xff]   ;;  %v4578_v8 = vld [vmem:[#allocation5 + $0x18] sm:$0xff]   ;;  %s4889_s25 = smov 80   ;;  %s4890_s22 = smov 32   ;;  %vm3320_vm8 = vcmask 130048  }
  0x5e   : > { %4066 = vmatpush3.bf16.msra.mxu1 %v4571_v1  ;;  %4043 = vmatprep.subr.bf16.mxu0 %v4572_v2  ;;  %v4577_v7 = vld [vmem:[#allocation5 + $0x60] sm:$0xff]   ;;  %v4579_v9 = vld [vmem:[#allocation5 + $0x58] sm:$0xff]   ;;  %v4580_v10 = vld [vmem:[#allocation5 + $0x10] sm:$0xff]   ;;  %s4891_s11 = smov 48   ;;  %s4892_s26 = smov 16   ;;  %vm3397_vm9 = vcmask 31744  }
  0x5f   : > { %4067 = vmatprep.subr.bf16.mxu1 %v4573_v3  ;;  %v418_v11 = vld [vmem:[%s5084_s29] sm:$0xff]  ;;  %v419_v12 = vld [vmem:[%s5084_s29 + $0x8] sm:$0xff]  ;;  %v4581_v13 = vld [vmem:[#allocation5 + $0x50] sm:$0xff]   ;;  %vm3504_vm10 = vcmask 261120   ;;  %vm3506_vm11 = vcmask 392192   ;;  %vm3508_vm12 = vcmask 523264  }
  0x60   : > { %v5096_v14 = vpack.c.bf16 %v419_v12, %v418_v11  ;;  %v4582_v15 = vld [vmem:[#allocation5 + $0x8] sm:$0xff]   ;;  %v4584_v17 = vld [vmem:[#allocation5] sm:$0xff]   ;;  %v420_v19 = vld [vmem:[%s5084_s29 + $0x10] sm:$0xff]  ;;  %vm3510_vm13 = vcmask 654336   ;;  %vm3512_vm14 = vcmask 785408   ;;  %vm3514_vm15 = vcmask 916480  }
  0x61   : > { %4044 = vmatpush3.bf16.msra.mxu0 %v4572_v2  ;;  %v4583_v16 = vld [vmem:[#allocation5 + $0x48] sm:$0xff]   ;;  %v4585_v18 = vld [vmem:[#allocation5 + $0x40] sm:$0xff]   ;;  %v421_v20 = vld [vmem:[%s5084_s29 + $0x18] sm:$0xff]  ;;  %p6115_p10 = scmp.ne.s32.totalorder %s6085_s27, 0 }
  0x62   : > { %4068 = vmatpush3.bf16.msra.mxu1 %v4573_v3  ;;  %4045 = vmatprep.subr.bf16.mxu0 %v4574_v4  ;;  %v4586_v21 = vld [vmem:[#allocation5 + $0xb8] sm:$0xff]   ;;  %v422_v23 = vld [vmem:[%s5084_s29 + $0x20] sm:$0xff]  ;;  %v5103_v24 = vpack.c.bf16 %v421_v20, %v420_v19  ;;  %v423_v25 = vld [vmem:[%s5084_s29 + $0x28] sm:$0xff] }
  0x63   : > { %4069 = vmatprep.subr.bf16.mxu1 %v4575_v5  ;;  %4057 = vmatprep.mubr.bf16.mxu0 %v5096_v14  ;;  %v4587_v22 = vld [vmem:[#allocation5 + $0xf8] sm:$0xff]   ;;  %v4588_v26 = vld [vmem:[#allocation5 + $0xb0] sm:$0xff]   ;;  %v5106_v28 = vpack.c.bf16 %v423_v25, %v422_v23  ;;  %v4590_v31 = vld [vmem:[#allocation5 + $0xa8] sm:$0xff]  }
  0x64   : > { %4081 = vmatprep.mubr.bf16.mxu1 %v5096_v14  ;;  %v4589_v27 = vld [vmem:[#allocation5 + $0xf0] sm:$0xff]   ;;  %v425_v30 = vld [vmem:[%s5084_s29 + $0x38] sm:$0xff]  ;;  %v4591_v32 = vld [vmem:[#allocation5 + $0xe8] sm:$0xff]  }
  0x65   : > { %4046 = vmatpush3.bf16.msra.mxu0 %v4574_v4  ;;  %v424_v29 = vld [vmem:[%s5084_s29 + $0x30] sm:$0xff]  ;;  %v4592_v34 = vld [vmem:[#allocation5 + $0xa0] sm:$0xff]   ;;  %v4594_v36 = vld [vmem:[#allocation5 + $0x98] sm:$0xff]  }
  0x66   : > { %4070 = vmatpush3.bf16.msra.mxu1 %v4575_v5  ;;  %4047 = vmatprep.subr.bf16.mxu0 %v4576_v6  ;;  %v5114_v33 = vpack.c.bf16 %v425_v30, %v424_v29  ;;  %v4593_v35 = vld [vmem:[#allocation5 + $0xe0] sm:$0xff]   ;;  %v4595_v37 = vld [vmem:[#allocation5 + $0xd8] sm:$0xff]   ;;  %v4596_v38 = vld [vmem:[#allocation5 + $0x90] sm:$0xff]   ;;  %v4883_v5 = vmov 0  }
  0x67   : > { %4071 = vmatprep.subr.bf16.mxu1 %v4577_v7  ;;  %v4597_v39 = vld [vmem:[#allocation5 + $0xd0] sm:$0xff]   ;;  %v4598_v40 = vld [vmem:[#allocation5 + $0x88] sm:$0xff]   ;;  %v4600_v42 = vld [vmem:[#allocation5 + $0x80] sm:$0xff]   ;;  %4569 = vset.pattern.permute.xlu1 %v4883_v5 }
  0x68   : > { %v4599_v41 = vld [vmem:[#allocation5 + $0xc8] sm:$0xff]   ;;  %v4601_v43 = vld [vmem:[#allocation5 + $0xc0] sm:$0xff]   ;;  %v4602_v44 = vld [vmem:[#allocation5 + $0x138] sm:$0xff]   ;;  %4568 = vset.pattern.permute.xlu0 %v4883_v5 }
  0x69   : > { %4048 = vmatpush3.bf16.msra.mxu0 %v4576_v6  ;;  %v4603_v45 = vld [vmem:[#allocation5 + $0x178] sm:$0xff]   ;;  %v4604_v46 = vld [vmem:[#allocation5 + $0x130] sm:$0xff]   ;;  %v4606_v48 = vld [vmem:[#allocation5 + $0x128] sm:$0xff]  }
  0x6a   : > { %4072 = vmatpush3.bf16.msra.mxu1 %v4577_v7  ;;  %4049 = vmatprep.subr.bf16.mxu0 %v4578_v8  ;;  %v4605_v47 = vld [vmem:[#allocation5 + $0x170] sm:$0xff]   ;;  %v4607_v49 = vld [vmem:[#allocation5 + $0x168] sm:$0xff]   ;;  %v4608_v50 = vld [vmem:[#allocation5 + $0x120] sm:$0xff]  }
  0x6b   : > { %4073 = vmatprep.subr.bf16.mxu1 %v4579_v9  ;;  %v4609_v51 = vld [vmem:[#allocation5 + $0x160] sm:$0xff]   ;;  %v4610_v52 = vld [vmem:[#allocation5 + $0x118] sm:$0xff]   ;;  %v4612_v54 = vld [vmem:[#allocation5 + $0x110] sm:$0xff]  }
  0x6c   : > { %v4611_v53 = vld [vmem:[#allocation5 + $0x158] sm:$0xff]   ;;  %v4613_v55 = vld [vmem:[#allocation5 + $0x150] sm:$0xff]   ;;  %v4614_v56 = vld [vmem:[#allocation5 + $0x108] sm:$0xff]  }
  0x6d   : > { %4050 = vmatpush3.bf16.msra.mxu0 %v4578_v8  ;;  %v4615_v57 = vld [vmem:[#allocation5 + $0x148] sm:$0xff]   ;;  %v4616_v58 = vld [vmem:[#allocation5 + $0x100] sm:$0xff]   ;;  %v4618_v60 = vld [vmem:[#allocation5 + $0x1b8] sm:$0xff]  }
  0x6e   : > { %4074 = vmatpush3.bf16.msra.mxu1 %v4579_v9  ;;  %4051 = vmatprep.subr.bf16.mxu0 %v4580_v10  ;;  %v4617_v59 = vld [vmem:[#allocation5 + $0x140] sm:$0xff]   ;;  %v4619_v61 = vld [vmem:[#allocation5 + $0x1f8] sm:$0xff]   ;;  %v4620_v62 = vld [vmem:[#allocation5 + $0x1b0] sm:$0xff]  }
  0x6f   : > { %4075 = vmatprep.subr.bf16.mxu1 %v4581_v13  ;;  %v4621_v63 = vld [vmem:[#allocation5 + $0x1f0] sm:$0xff]   ;;  %v4622_v0 = vld [vmem:[#allocation5 + $0x1a8] sm:$0xff]   ;;  %v4624_v2 = vld [vmem:[#allocation5 + $0x1a0] sm:$0xff]  }
  0x70   : > { %v4623_v1 = vld [vmem:[#allocation5 + $0x1e8] sm:$0xff]   ;;  %v4625_v3 = vld [vmem:[#allocation5 + $0x1e0] sm:$0xff]   ;;  %v4626_v4 = vld [vmem:[#allocation5 + $0x198] sm:$0xff]  }
  0x71   : > { %4052 = vmatpush3.bf16.msra.mxu0 %v4580_v10  ;;  %v412_v6 = vld [vmem:[%s6047_s0 + $0x10] sm:$0xff]  ;;  %v4627_v7 = vld [vmem:[#allocation5 + $0x1d8] sm:$0xff]   ;;  %v410_v8 = vld [vmem:[%s6047_s0] sm:$0xff] }
  0x72   : > { %4076 = vmatpush3.bf16.msra.mxu1 %v4581_v13  ;;  %4053 = vmatprep.subr.bf16.mxu0 %v4582_v15  ;;  %v4628_v9 = vld [vmem:[#allocation5 + $0x190] sm:$0xff]   ;;  %v413_v10 = vld [vmem:[%s6047_s0 + $0x18] sm:$0xff]  ;;  %v411_v12 = vld [vmem:[%s6047_s0 + $0x8] sm:$0xff] }
  0x73   : > { %4077 = vmatprep.subr.bf16.mxu1 %v4583_v16  ;;  %1842 = vperm.xlu1 %4569, %v412_v6   ;;  %v4629_v11 = vld [vmem:[#allocation5 + $0x1d0] sm:$0xff]   ;;  %v4630_v13 = vld [vmem:[#allocation5 + $0x188] sm:$0xff]   ;;  %v4632_v19 = vld [vmem:[#allocation5 + $0x180] sm:$0xff]  }
  0x74   : > { %1832 = vperm.xlu0 %4568, %v410_v8   ;;  %v4633_v20 = vld [vmem:[#allocation5 + $0x1c0] sm:$0xff]   ;;  %v4635_v23 = vld [vmem:[#allocation5 + $0x230] sm:$0xff]   ;;  %v4636_v25 = vld [vmem:[#allocation5 + $0x228] sm:$0xff]  }
  0x75   : > { %4054 = vmatpush3.bf16.msra.mxu0 %v4582_v15  ;;  %v4631_v15 = vld [vmem:[#allocation5 + $0x1c8] sm:$0xff]   ;;  %v4639_v29 = vld [vmem:[#allocation5 + $0x210] sm:$0xff]  }
  0x76   : > { %4078 = vmatpush3.bf16.msra.mxu1 %v4583_v16  ;;  %4055 = vmatprep.subr.bf16.mxu0 %v4584_v17  ;;  %v415_v16 = vld [vmem:[%s6047_s0 + $0x28] sm:$0xff] }
  0x77   : > { %4079 = vmatprep.subr.bf16.mxu1 %v4585_v18  ;;  %1847 = vperm.xlu1 %4569, %v413_v10   ;;  %v4640_v30 = vld [vmem:[#allocation5 + $0x208] sm:$0xff]  }
  0x78   : > { %1837 = vperm.xlu0 %4568, %v411_v12  }
  0x79   : > { %4056 = vmatpush3.bf16.msra.mxu0 %v4584_v17  ;;  %v414_v17 = vld [vmem:[%s6047_s0 + $0x20] sm:$0xff] }
  0x7a   : > { %4080 = vmatpush3.bf16.msra.mxu1 %v4585_v18  ;;  %4089 = vmatprep.subr.bf16.mxu0 %v4586_v21  ;;  %v417_v18 = vld [vmem:[%s6047_s0 + $0x38] sm:$0xff] }
  0x7b   : > { %4113 = vmatprep.subr.bf16.mxu1 %v4587_v22  ;;  %1857 = vperm.xlu1 %4569, %v415_v16  }
  0x7c   : > { %4058 = vmatmul.mubr.bf16.vlgmr.msra.gmra.mxu0 %v5103_v24  ;;  %1852 = vperm.xlu0 %4568, %v414_v17  }
  0x7d   : > { %4082 = vmatmul.mubr.bf16.vlgmr.msra.gmra.mxu1 %v5103_v24  ;;  %4090 = vmatpush3.bf16.msra.mxu0 %v4586_v21  ;;  %v416_v21 = vld [vmem:[%s6047_s0 + $0x30] sm:$0xff] }
  0x7e   : > { %4114 = vmatpush3.bf16.msra.mxu1 %v4587_v22  ;;  %4091 = vmatprep.subr.bf16.mxu0 %v4588_v26  ;;  %v4634_v22 = vld [vmem:[#allocation5 + $0x238] sm:$0xff]  }
  0x7f   : > { %4115 = vmatprep.subr.bf16.mxu1 %v4589_v27  ;;  %4061 = vmatprep.mubr.bf16.mxu0 %v5106_v28 }
  0x80   : > { %4085 = vmatprep.mubr.bf16.mxu1 %v5106_v28  ;;  %1867 = vperm.xlu1 %4569, %v417_v18  }
  0x81   : > { %4092 = vmatpush3.bf16.msra.mxu0 %v4588_v26  ;;  %1862 = vperm.xlu0 %4568, %v416_v21   ;;  %v4637_v26 = vld [vmem:[#allocation5 + $0x220] sm:$0xff]  }
  0x82   : > { %4116 = vmatpush3.bf16.msra.mxu1 %v4589_v27  ;;  %4093 = vmatprep.subr.bf16.mxu0 %v4590_v31  ;;  %v4638_v27 = vld [vmem:[#allocation5 + $0x218] sm:$0xff]  }
  0x83   : > { %4117 = vmatprep.subr.bf16.mxu1 %v4591_v32 }
  0x84   : > { %4062 = vmatmul.mubr.bf16.gmra.mxu0 %v5114_v33 }
  0x85   : > { %4086 = vmatmul.mubr.bf16.gmra.mxu1 %v5114_v33  ;;  %4094 = vmatpush3.bf16.msra.mxu0 %v4590_v31  ;;  %v4641_v31 = vld [vmem:[#allocation5 + $0x200] sm:$0xff]  }
  0x86   : > { %4118 = vmatpush3.bf16.msra.mxu1 %v4591_v32  ;;  %4095 = vmatprep.subr.bf16.mxu0 %v4592_v34  ;;  %v4642_v32 = vld [vmem:[#allocation7 + $0x38] sm:$0xff]  }
  0x87   : > { %4119 = vmatprep.subr.bf16.mxu1 %v4593_v35  ;;  %4105 = vmatprep.mubr.bf16.mxu0 %v5096_v14 }
  0x88   : > { %4129 = vmatprep.mubr.bf16.mxu1 %v5096_v14 }
  0x89   : > { %4096 = vmatpush3.bf16.msra.mxu0 %v4592_v34  ;;  %v4644_v34 = vld [vmem:[#allocation7 + $0x30] sm:$0xff]  }
  0x8a   : > { %4120 = vmatpush3.bf16.msra.mxu1 %v4593_v35  ;;  %4097 = vmatprep.subr.bf16.mxu0 %v4594_v36  ;;  %v4645_v35 = vld [vmem:[#allocation7 + $0x70] sm:$0xff]  }
  0x8b   : > { %4121 = vmatprep.subr.bf16.mxu1 %v4595_v37 }
  0x8d   : > { %4098 = vmatpush3.bf16.msra.mxu0 %v4594_v36  ;;  %v4646_v36 = vld [vmem:[#allocation7 + $0x28] sm:$0xff]  }
  0x8e   : > { %4122 = vmatpush3.bf16.msra.mxu1 %v4595_v37  ;;  %4099 = vmatprep.subr.bf16.mxu0 %v4596_v38  ;;  %v4647_v37 = vld [vmem:[#allocation7 + $0x68] sm:$0xff]  }
  0x8f   : > { %4123 = vmatprep.subr.bf16.mxu1 %v4597_v39 }
  0x91   : > { %4100 = vmatpush3.bf16.msra.mxu0 %v4596_v38  ;;  %v4650_v38 = vld [vmem:[#allocation7 + $0x18] sm:$0xff]  }
  0x92   : > { %4124 = vmatpush3.bf16.msra.mxu1 %v4597_v39  ;;  %4101 = vmatprep.subr.bf16.mxu0 %v4598_v40  ;;  %v4651_v39 = vld [vmem:[#allocation7 + $0x58] sm:$0xff]  }
  0x93   : > { %4125 = vmatprep.subr.bf16.mxu1 %v4599_v41 }
  0x95   : > { %4102 = vmatpush3.bf16.msra.mxu0 %v4598_v40 }
  0x96   : > { %4126 = vmatpush3.bf16.msra.mxu1 %v4599_v41  ;;  %4103 = vmatprep.subr.bf16.mxu0 %v4600_v42  ;;  %v4652_v41 = vld [vmem:[#allocation7 + $0x10] sm:$0xff]  }
  0x97   : > { %4127 = vmatprep.subr.bf16.mxu1 %v4601_v43 }
  0x99   : > { %4104 = vmatpush3.bf16.msra.mxu0 %v4600_v42  ;;  %v4653_v42 = vld [vmem:[#allocation7 + $0x50] sm:$0xff]  }
  0x9a   : > { %4128 = vmatpush3.bf16.msra.mxu1 %v4601_v43  ;;  %4137 = vmatprep.subr.bf16.mxu0 %v4602_v44 }
  0x9b   : > { %4161 = vmatprep.subr.bf16.mxu1 %v4603_v45 }
  0x9c   : > { %4106 = vmatmul.mubr.bf16.vlgmr.msra.gmra.mxu0 %v5103_v24 }
  0x9d   : > { %4130 = vmatmul.mubr.bf16.vlgmr.msra.gmra.mxu1 %v5103_v24  ;;  %4138 = vmatpush3.bf16.msra.mxu0 %v4602_v44 }
  0x9e   : > { %4162 = vmatpush3.bf16.msra.mxu1 %v4603_v45  ;;  %4139 = vmatprep.subr.bf16.mxu0 %v4604_v46  ;;  %v4654_v45 = vld [vmem:[#allocation7 + $0x8] sm:$0xff]  }
  0x9f   : > { %4163 = vmatprep.subr.bf16.mxu1 %v4605_v47  ;;  %4109 = vmatprep.mubr.bf16.mxu0 %v5106_v28 }
  0xa0   : > { %4133 = vmatprep.mubr.bf16.mxu1 %v5106_v28 }
  0xa1   : > { %4140 = vmatpush3.bf16.msra.mxu0 %v4604_v46  ;;  %v4655_v46 = vld [vmem:[#allocation7 + $0x48] sm:$0xff]  }
  0xa2   : > { %4164 = vmatpush3.bf16.msra.mxu1 %v4605_v47  ;;  %4141 = vmatprep.subr.bf16.mxu0 %v4606_v48 }
  0xa3   : > { %4165 = vmatprep.subr.bf16.mxu1 %v4607_v49 }
  0xa4   : > { %4110 = vmatmul.mubr.bf16.gmra.mxu0 %v5114_v33 }
  0xa5   : > { %4134 = vmatmul.mubr.bf16.gmra.mxu1 %v5114_v33  ;;  %4142 = vmatpush3.bf16.msra.mxu0 %v4606_v48 }
  0xa6   : > { %4166 = vmatpush3.bf16.msra.mxu1 %v4607_v49  ;;  %4143 = vmatprep.subr.bf16.mxu0 %v4608_v50  ;;  %v4656_v49 = vld [vmem:[#allocation7] sm:$0xff]  }
  0xa7   : > { %4167 = vmatprep.subr.bf16.mxu1 %v4609_v51  ;;  %4153 = vmatprep.mubr.bf16.mxu0 %v5096_v14 }
  0xa8   : > { %4177 = vmatprep.mubr.bf16.mxu1 %v5096_v14 }
  0xa9   : > { %4144 = vmatpush3.bf16.msra.mxu0 %v4608_v50  ;;  %v4657_v50 = vld [vmem:[#allocation7 + $0x40] sm:$0xff]  }
  0xaa   : > { %4168 = vmatpush3.bf16.msra.mxu1 %v4609_v51  ;;  %4145 = vmatprep.subr.bf16.mxu0 %v4610_v52 }
  0xab   : > { %4169 = vmatprep.subr.bf16.mxu1 %v4611_v53 }
  0xad   : > { %4146 = vmatpush3.bf16.msra.mxu0 %v4610_v52 }
  0xae   : > { %4170 = vmatpush3.bf16.msra.mxu1 %v4611_v53  ;;  %4147 = vmatprep.subr.bf16.mxu0 %v4612_v54  ;;  %v5186_v53 = vld [vmem:[#allocation7 + $0xb8] sm:$0xff]  }
  0xaf   : > { %4171 = vmatprep.subr.bf16.mxu1 %v4613_v55  ;;  %6092 = vst [vmem:[#allocation14_spill] sm:$0xff] %v5186_v53 }
  0xb1   : > { %4148 = vmatpush3.bf16.msra.mxu0 %v4612_v54  ;;  %v5188_v54 = vld [vmem:[#allocation7 + $0xf8] sm:$0xff]  }
  0xb2   : > { %4172 = vmatpush3.bf16.msra.mxu1 %v4613_v55  ;;  %4149 = vmatprep.subr.bf16.mxu0 %v4614_v56  ;;  %6093 = vst [vmem:[#allocation15_spill] sm:$0xff] %v5188_v54 }
  0xb3   : > { %4173 = vmatprep.subr.bf16.mxu1 %v4615_v57 }
  0xb5   : > { %4150 = vmatpush3.bf16.msra.mxu0 %v4614_v56 }
  0xb6   : > { %4174 = vmatpush3.bf16.msra.mxu1 %v4615_v57  ;;  %4151 = vmatprep.subr.bf16.mxu0 %v4616_v58 }
  0xb7   : > { %4175 = vmatprep.subr.bf16.mxu1 %v4617_v59 }
  0xb9   : > { %4152 = vmatpush3.bf16.msra.mxu0 %v4616_v58 }
  0xba   : > { %4176 = vmatpush3.bf16.msra.mxu1 %v4617_v59  ;;  %4185 = vmatprep.subr.bf16.mxu0 %v4618_v60 }
  0xbb   : > { %4209 = vmatprep.subr.bf16.mxu1 %v4619_v61 }
  0xbc   : > { %4154 = vmatmul.mubr.bf16.vlgmr.msra.gmra.mxu0 %v5103_v24 }
  0xbd   : > { %4178 = vmatmul.mubr.bf16.vlgmr.msra.gmra.mxu1 %v5103_v24  ;;  %4186 = vmatpush3.bf16.msra.mxu0 %v4618_v60 }
  0xbe   : > { %4210 = vmatpush3.bf16.msra.mxu1 %v4619_v61  ;;  %4187 = vmatprep.subr.bf16.mxu0 %v4620_v62 }
  0xbf   : > { %4211 = vmatprep.subr.bf16.mxu1 %v4621_v63  ;;  %4157 = vmatprep.mubr.bf16.mxu0 %v5106_v28 }
  0xc0   : > { %4181 = vmatprep.mubr.bf16.mxu1 %v5106_v28 }
  0xc1   : > { %4188 = vmatpush3.bf16.msra.mxu0 %v4620_v62 }
  0xc2   : > { %4212 = vmatpush3.bf16.msra.mxu1 %v4621_v63  ;;  %4189 = vmatprep.subr.bf16.mxu0 %v4622_v0 }
  0xc3   : > { %4213 = vmatprep.subr.bf16.mxu1 %v4623_v1 }
  0xc4   : > { %4158 = vmatmul.mubr.bf16.gmra.mxu0 %v5114_v33 }
  0xc5   : > { %4182 = vmatmul.mubr.bf16.gmra.mxu1 %v5114_v33  ;;  %4190 = vmatpush3.bf16.msra.mxu0 %v4622_v0 }
  0xc6   : > { %4214 = vmatpush3.bf16.msra.mxu1 %v4623_v1  ;;  %4191 = vmatprep.subr.bf16.mxu0 %v4624_v2 }
  0xc7   : > { %4215 = vmatprep.subr.bf16.mxu1 %v4625_v3  ;;  %4201 = vmatprep.mubr.bf16.mxu0 %v5096_v14 }
  0xc8   : > { %4225 = vmatprep.mubr.bf16.mxu1 %v5096_v14 }
  0xc9   : > { %4192 = vmatpush3.bf16.msra.mxu0 %v4624_v2 }
  0xca   : > { %4216 = vmatpush3.bf16.msra.mxu1 %v4625_v3  ;;  %4193 = vmatprep.subr.bf16.mxu0 %v4626_v4 }
  0xcb   : > { %4217 = vmatprep.subr.bf16.mxu1 %v4627_v7 }
  0xcd   : > { %4194 = vmatpush3.bf16.msra.mxu0 %v4626_v4 }
  0xce   : > { %4218 = vmatpush3.bf16.msra.mxu1 %v4627_v7  ;;  %4195 = vmatprep.subr.bf16.mxu0 %v4628_v9 }
  0xcf   : > { %4219 = vmatprep.subr.bf16.mxu1 %v4629_v11 }
  0xd1   : > { %4196 = vmatpush3.bf16.msra.mxu0 %v4628_v9 }
  0xd2   : > { %4220 = vmatpush3.bf16.msra.mxu1 %v4629_v11  ;;  %4197 = vmatprep.subr.bf16.mxu0 %v4630_v13 }
  0xd3   : > { %4221 = vmatprep.subr.bf16.mxu1 %v4631_v15 }
  0xd5   : > { %4198 = vmatpush3.bf16.msra.mxu0 %v4630_v13 }
  0xd6   : > { %4222 = vmatpush3.bf16.msra.mxu1 %v4631_v15  ;;  %4199 = vmatprep.subr.bf16.mxu0 %v4632_v19 }
  0xd7   : > { %4223 = vmatprep.subr.bf16.mxu1 %v4633_v20 }
  0xd9   : > { %4200 = vmatpush3.bf16.msra.mxu0 %v4632_v19 }
  0xda   : > { %4224 = vmatpush3.bf16.msra.mxu1 %v4633_v20  ;;  %4233 = vmatprep.subr.bf16.mxu0 %v4634_v22 }
  0xdb   : > { %4257 = vmatprep.subr.bf16.mxu1 %v4642_v32 }
  0xdc   : > { %4202 = vmatmul.mubr.bf16.vlgmr.msra.gmra.mxu0 %v5103_v24 }
  0xdd   : > { %4234 = vmatpush3.bf16.msra.mxu0 %v4634_v22  ;;  %4226 = vmatmul.mubr.bf16.vlgmr.msra.gmra.mxu1 %v5103_v24 }
  0xde   : > { %4235 = vmatprep.subr.bf16.mxu0 %v4635_v23  ;;  %4205 = vmatprep.mubr.bf16.mxu0 %v5106_v28 }
  0xdf   : > { %4229 = vmatprep.mubr.bf16.mxu1 %v5106_v28  ;;  %4258 = vmatpush3.bf16.msra.mxu1 %v4642_v32 }
  0xe0   : > { %4259 = vmatprep.subr.bf16.mxu1 %v4644_v34 }
  0xe1   : > { %4236 = vmatpush3.bf16.msra.mxu0 %v4635_v23 }
  0xe2   : > { %4237 = vmatprep.subr.bf16.mxu0 %v4636_v25 }
  0xe3   : > { %4260 = vmatpush3.bf16.msra.mxu1 %v4644_v34 }
  0xe4   : > { %4206 = vmatmul.mubr.bf16.gmra.mxu0 %v5114_v33  ;;  %4261 = vmatprep.subr.bf16.mxu1 %v4646_v36 }
  0xe5   : > { %4238 = vmatpush3.bf16.msra.mxu0 %v4636_v25  ;;  %4230 = vmatmul.mubr.bf16.gmra.mxu1 %v5114_v33  ;;  %v567_v25 = vlaneseq }
  0xe6   : > { %4239 = vmatprep.subr.bf16.mxu0 %v4637_v26  ;;  %4249 = vmatprep.mubr.bf16.mxu0 %v5096_v14  ;;  %v4643_v14 = vld [vmem:[#allocation7 + $0x78] sm:$0xff]  }
  0xe7   : > { %4262 = vmatpush3.bf16.msra.mxu1 %v4646_v36 }
  0xe9   : > { %4240 = vmatpush3.bf16.msra.mxu0 %v4637_v26 }
  0xea   : > { %4241 = vmatprep.subr.bf16.mxu0 %v4638_v27 }
  0xed   : > { %4242 = vmatpush3.bf16.msra.mxu0 %v4638_v27 }
  0xee   : > { %4243 = vmatprep.subr.bf16.mxu0 %v4639_v29 }
  0xf1   : > { %4244 = vmatpush3.bf16.msra.mxu0 %v4639_v29  ;;  %v5260_v29 = vshrl.u32 %v567_v25, 7 }
  0xf2   : > { %4245 = vmatprep.subr.bf16.mxu0 %v4640_v30 }
  0xf3   : > { %vm569_vm0 = vcmp.lt.s32.totalorder %v5260_v29, 3  ;;  %vm724_vm1 = vcmp.lt.s32.totalorder %v5260_v29, 2  ;;  %vm879_vm2 = vcmp.lt.s32.totalorder %v5260_v29, 1  ;;  %vm1326_vm3 = vcmp.lt.s32.totalorder %v5260_v29, 7 }
  0xf4   : > { %vm1635_vm4 = vcmp.lt.s32.totalorder %v5260_v29, 6  ;;  %vm1790_vm5 = vcmp.lt.s32.totalorder %v5260_v29, 5 }
  0xf5   : > { %4246 = vmatpush3.bf16.msra.mxu0 %v4640_v30 }
  0xf6   : > { %4247 = vmatprep.subr.bf16.mxu0 %v4641_v31 }
  0xf9   : > { %4248 = vmatpush3.bf16.msra.mxu0 %v4641_v31 }
  0xfa   : > { %4281 = vmatprep.subr.bf16.mxu0 %v4643_v14 }
  0xfc   : > { %4250 = vmatmul.mubr.bf16.vlgmr.msra.gmra.mxu0 %v5103_v24  ;;  %v4648_v24 = vld [vmem:[#allocation7 + $0x20] sm:$0xff]  }
  0xfd   : > { %4253 = vmatprep.mubr.bf16.mxu0 %v5106_v28  ;;  %4282 = vmatpush3.bf16.msra.mxu0 %v4643_v14  ;;  %v4649_v28 = vld [vmem:[#allocation7 + $0x60] sm:$0xff]  }
  0xfe   : > { %4283 = vmatprep.subr.bf16.mxu0 %v4645_v35  ;;  %4263 = vmatprep.subr.bf16.mxu1 %v4648_v24 }
  0xff   : > { %4264 = vmatpush3.bf16.msra.mxu1 %v4648_v24 }
 0x100   : > { %4265 = vmatprep.subr.bf16.mxu1 %v4650_v38 }
 0x101   : > { %4284 = vmatpush3.bf16.msra.mxu0 %v4645_v35 }
 0x102   : > { %4285 = vmatprep.subr.bf16.mxu0 %v4647_v37 }
 0x103   : > { %4266 = vmatpush3.bf16.msra.mxu1 %v4650_v38 }
 0x104   : > { %4254 = vmatmul.mubr.bf16.gmra.mxu0 %v5114_v33  ;;  %4267 = vmatprep.subr.bf16.mxu1 %v4652_v41 }
 0x105   : > { %4286 = vmatpush3.bf16.msra.mxu0 %v4647_v37 }
 0x106   : > { %4287 = vmatprep.subr.bf16.mxu0 %v4649_v28 }
 0x107   : > { %4268 = vmatpush3.bf16.msra.mxu1 %v4652_v41 }
 0x108   : > { %4269 = vmatprep.subr.bf16.mxu1 %v4654_v45 }
 0x109   : > { %4288 = vmatpush3.bf16.msra.mxu0 %v4649_v28 }
 0x10a   : > { %4289 = vmatprep.subr.bf16.mxu0 %v4651_v39 }
 0x10b   : > { %4270 = vmatpush3.bf16.msra.mxu1 %v4654_v45 }
 0x10c   : > { %4271 = vmatprep.subr.bf16.mxu1 %v4656_v49 }
 0x10d   : > { %4290 = vmatpush3.bf16.msra.mxu0 %v4651_v39 }
 0x10e   : > { %4291 = vmatprep.subr.bf16.mxu0 %v4653_v42 }
 0x10f   : > { %4272 = vmatpush3.bf16.msra.mxu1 %v4656_v49 }
 0x110   : > { %4305 = vmatprep.subr.bf16.mxu1 %v5186_v53 }
 0x111   : > { %4292 = vmatpush3.bf16.msra.mxu0 %v4653_v42 }
 0x112   : > { %4293 = vmatprep.subr.bf16.mxu0 %v4655_v46 }
 0x115   : > { %4294 = vmatpush3.bf16.msra.mxu0 %v4655_v46 }
 0x116   : > { %4295 = vmatprep.subr.bf16.mxu0 %v4657_v50 }
 0x119   : > { %4296 = vmatpush3.bf16.msra.mxu0 %v4657_v50 }
 0x11a   : > { %4329 = vmatprep.subr.bf16.mxu0 %v5188_v54 }
 0x13c   : > { %v5170_v33 = vpop.f32.mrf.mxu0 }
 0x13d   : > { %v5174_v43 = vpop.f32.mrf.mxu1  ;;  %v561_v38 = vrot.slane %v5170_v33, 5 }
 0x13e   : > { %v5172_v40 = vpop.f32.mrf.mxu0  ;;  %v718_v32 = vrot.slane %v5174_v43, 6 }
 0x13f   : > { %v5178_v47 = vpop.f32.mrf.mxu1  ;;  %v559_v42 = vrot.slane %v5172_v40, 5 }
 0x140   : > { %v5176_v44 = vpop.f32.mrf.mxu0  ;;  %v716_v36 = vrot.slane %v5178_v47, 6 }
 0x141   : > { %v5182_v51 = vpop.f32.mrf.mxu1  ;;  %v562_v14 = vrot.slane %v5176_v44, 5 }
 0x142   : > { %v5180_v48 = vpop.f32.mrf.mxu0  ;;  %v719_v34 = vrot.slane %v5182_v51, 6 }
 0x143   : > { %v5190_v55 = vpop.f32.mrf.mxu1  ;;  %v560_v37 = vrot.slane %v5180_v48, 5  ;;  %v574_v46 = vsel %vm569_vm0, %v561_v38, %v562_v14 }
 0x144   : > { %v5184_v52 = vpop.f32.mrf.mxu0  ;;  %v717_v24 = vrot.slane %v5190_v55, 6  ;;  %v729_v47 = vsel %vm724_vm1, %v718_v32, %v719_v34 }
 0x145   : > { %v5196_v57 = vpop.f32.mrf.mxu1  ;;  %v565_v43 = vrot.slane %v5184_v52, 5  ;;  %v575_v40 = vsel %vm569_vm0, %v560_v37, %v561_v38  ;;  %v576_v50 = vsel %vm569_vm0, %v559_v42, %v560_v37 }
 0x146   : > { %v5194_v56 = vpop.f32.mrf.mxu0  ;;  %v722_v44 = vrot.slane %v5196_v57, 6  ;;  %v730_v51 = vsel %vm724_vm1, %v717_v24, %v718_v32  ;;  %v731_v52 = vsel %vm724_vm1, %v716_v36, %v717_v24 }
 0x147   : > { %v5202_v60 = vpop.f32.mrf.mxu1  ;;  %v563_v39 = vrot.slane %v5194_v56, 5  ;;  %v736_v37 = vadd.f32 %v730_v51, %v575_v40 }
 0x148   : > { %v5198_v58 = vpop.f32.mrf.mxu0  ;;  %v720_v41 = vrot.slane %v5202_v60, 6 }
 0x149   : > { %v5206_v62 = vpop.f32.mrf.mxu1  ;;  %v566_v33 = vrot.slane %v5198_v58, 5  ;;  %v573_v55 = vsel %vm569_vm0, %v562_v14, %v563_v39 }
 0x14a   : > { %v5200_v59 = vpop.f32.mrf.mxu0  ;;  %v723_v48 = vrot.slane %v5206_v62, 6  ;;  %v728_v56 = vsel %vm724_vm1, %v719_v34, %v720_v41 }
 0x14b   : > { %v5210_v0 = vpop.f32.mrf.mxu1  ;;  %v564_v57 = vrot.slane %v5200_v59, 5  ;;  %v570_v60 = vsel %vm569_vm0, %v565_v43, %v566_v33  ;;  %v577_v32 = vsel %vm569_vm0, %v566_v33, %v559_v42  ;;  %v737_v59 = vadd.f32 %v729_v47, %v574_v46 }
 0x14c   : > { %v721_v58 = vrot.slane %v5210_v0, 6  ;;  %v725_v62 = vsel %vm724_vm1, %v722_v44, %v723_v48  ;;  %v732_v14 = vsel %vm724_vm1, %v723_v48, %v716_v36  ;;  %v735_v0 = vadd.f32 %v731_v52, %v576_v50 }
 0x14d   : > { %v738_v24 = vadd.f32 %v728_v56, %v573_v55  ;;  %v733_v38 = vadd.f32 %v725_v62, %v570_v60  ;;  %v572_v54 = vsel %vm569_vm0, %v563_v39, %v564_v57  ;;  %v734_v36 = vadd.f32 %v732_v14, %v577_v32 }
 0x14e   : > { %v727_v53 = vsel %vm724_vm1, %v720_v41, %v721_v58  ;;  %v571_v48 = vsel %vm569_vm0, %v564_v57, %v565_v43  ;;  %v726_v46 = vsel %vm724_vm1, %v721_v58, %v722_v44 }
 0x14f   : > { %v739_v51 = vadd.f32 %v727_v53, %v572_v54  ;;  %v740_v44 = vadd.f32 %v726_v46, %v571_v48 }
 0x15c   : > { %v5204_v61 = vpop.f32.mrf.mxu0 }
 0x15d   : > { %v5212_v1 = vpop.f32.mrf.mxu1  ;;  %v873_v39 = vrot.slane %v5204_v61, 7 }
 0x15e   : > { %v5208_v63 = vpop.f32.mrf.mxu0  ;;  %v1028_v50 = vrot.slane %v5212_v1, 7 }
 0x15f   : > { %v5216_v3 = vpop.f32.mrf.mxu1  ;;  %v871_v52 = vrot.slane %v5208_v63, 7 }
 0x160   : > { %v5214_v2 = vpop.f32.mrf.mxu0 }
 0x161   : > { %v5220_v5 = vpop.f32.mrf.mxu1  ;;  %v874_v42 = vrot.slane %v5214_v2, 7 }
 0x162   : > { %v5218_v4 = vpop.f32.mrf.mxu0  ;;  %v1029_v41 = vrot.slane %v5220_v5, 7 }
 0x163   : > { %v5224_v7 = vpop.f32.mrf.mxu1  ;;  %v872_v47 = vrot.slane %v5218_v4, 7  ;;  %v1026_v4 = vrot.slane %v5216_v3, 7  ;;  %v884_v56 = vsel %vm879_vm2, %v873_v39, %v874_v42 }
 0x164   : > { %v5222_v6 = vpop.f32.mrf.mxu0  ;;  %v1027_v61 = vrot.slane %v5224_v7, 7  ;;  %v892_v58 = vadd.f32 %v884_v56, %v737_v59 }
 0x165   : > { %v5228_v9 = vpop.f32.mrf.mxu1  ;;  %v877_v43 = vrot.slane %v5222_v6, 7  ;;  %v885_v53 = vsel %vm879_vm2, %v872_v47, %v873_v39  ;;  %v886_v54 = vsel %vm879_vm2, %v871_v52, %v872_v47 }
 0x166   : > { %v5226_v8 = vpop.f32.mrf.mxu0  ;;  %v1032_v6 = vrot.slane %v5228_v9, 7  ;;  %v890_v60 = vadd.f32 %v886_v54, %v735_v0  ;;  %v1039_v62 = vsel %vm879_vm2, %v1027_v61, %v1028_v50  ;;  %v1040_v46 = vsel %vm879_vm2, %v1026_v4, %v1027_v61 }
 0x167   : > { %v5232_v11 = vpop.f32.mrf.mxu1  ;;  %v875_v63 = vrot.slane %v5226_v8, 7 }
 0x168   : > { %v5230_v10 = vpop.f32.mrf.mxu0  ;;  %v1030_v5 = vrot.slane %v5232_v11, 7 }
 0x169   : > { %v5238_v15 = vpop.f32.mrf.mxu1  ;;  %v878_v2 = vrot.slane %v5230_v10, 7  ;;  %v883_v14 = vsel %vm879_vm2, %v874_v42, %v875_v63 }
 0x16a   : > { %v5234_v12 = vpop.f32.mrf.mxu0  ;;  %v1033_v10 = vrot.slane %v5238_v15, 7  ;;  %v891_v15 = vadd.f32 %v885_v53, %v736_v37 }
 0x16b   : > { %v5242_v17 = vpop.f32.mrf.mxu1  ;;  %v876_v55 = vrot.slane %v5234_v12, 7  ;;  %v887_v7 = vsel %vm879_vm2, %v878_v2, %v871_v52  ;;  %v1038_v12 = vsel %vm879_vm2, %v1028_v50, %v1029_v41  ;;  %v880_v57 = vsel %vm879_vm2, %v877_v43, %v878_v2 }
 0x16c   : > { %v1031_v11 = vrot.slane %v5242_v17, 7  ;;  %v889_v48 = vadd.f32 %v887_v7, %v734_v36  ;;  %v1037_v17 = vsel %vm879_vm2, %v1029_v41, %v1030_v5  ;;  %v888_v47 = vadd.f32 %v880_v57, %v733_v38 }
 0x16d   : > { %v882_v8 = vsel %vm879_vm2, %v875_v63, %v876_v55  ;;  %v881_v9 = vsel %vm879_vm2, %v876_v55, %v877_v43  ;;  %v1041_v0 = vsel %vm879_vm2, %v1033_v10, %v1026_v4  ;;  %v1034_v38 = vsel %vm879_vm2, %v1032_v6, %v1033_v10 }
 0x16e   : > { %v894_v39 = vadd.f32 %v882_v8, %v739_v51  ;;  %v1035_v37 = vsel %vm879_vm2, %v1031_v11, %v1032_v6  ;;  %v895_v36 = vadd.f32 %v881_v9, %v740_v44  ;;  %v1036_v2 = vsel %vm879_vm2, %v1030_v5, %v1031_v11 }
 0x16f   : > { %v893_v43 = vadd.f32 %v883_v14, %v738_v24  ;;  %v1044_v55 = vadd.f32 %v1039_v62, %v890_v60  ;;  %v1045_v4 = vadd.f32 %v1038_v12, %v891_v15  ;;  %v1043_v56 = vadd.f32 %v1040_v46, %v889_v48 }
 0x170   : > { %v1048_v44 = vadd.f32 %v1035_v37, %v894_v39  ;;  %v1046_v61 = vadd.f32 %v1037_v17, %v892_v58  ;;  %v1049_v54 = vadd.f32 %v1034_v38, %v895_v36 }
 0x171   : > { %v1047_v53 = vadd.f32 %v1036_v2, %v893_v43 }
 0x17c   : > { %v5236_v13 = vpop.f32.mrf.mxu0 }
 0x17d   : > { %v5244_v18 = vpop.f32.mrf.mxu1 }
 0x17e   : > { %v5240_v16 = vpop.f32.mrf.mxu0  ;;  %v1320_v50 = vrot.slane %v5244_v18, 1 }
 0x17f   : > { %v5248_v20 = vpop.f32.mrf.mxu1 }
 0x180   : > { %v5246_v19 = vpop.f32.mrf.mxu0  ;;  %v1318_v41 = vrot.slane %v5248_v20, 1  ;;  %v1182_v20 = vadd.f32 %v5236_v13, %v1044_v55 }
 0x181   : > { %v5252_v22 = vpop.f32.mrf.mxu1  ;;  %v1183_v13 = vadd.f32 %v5246_v19, %v1045_v4 }
 0x182   : > { %v5250_v21 = vpop.f32.mrf.mxu0  ;;  %v1321_v42 = vrot.slane %v5252_v22, 1  ;;  %v1042_v22 = vadd.f32 %v1041_v0, %v888_v47 }
 0x183   : > { %v5256_v26 = vpop.f32.mrf.mxu1  ;;  %v1181_v24 = vadd.f32 %v5250_v21, %v1043_v56 }
 0x184   : > { %v5254_v23 = vpop.f32.mrf.mxu0  ;;  %v1319_v52 = vrot.slane %v5256_v26, 1  ;;  %v1331_v26 = vsel %vm1326_vm3, %v1320_v50, %v1321_v42  ;;  %v1180_v63 = vadd.f32 %v5240_v16, %v1042_v22 }
 0x185   : > { %v5262_v30 = vpop.f32.mrf.mxu1  ;;  %v1337_v16 = vadd.f32 %v1331_v26, %v1182_v20  ;;  %v1186_v11 = vadd.f32 %v5254_v23, %v1048_v44 }
 0x186   : > { %v5258_v27 = vpop.f32.mrf.mxu0  ;;  %v1332_v5 = vsel %vm1326_vm3, %v1319_v52, %v1320_v50  ;;  %v1333_v6 = vsel %vm1326_vm3, %v1318_v41, %v1319_v52  ;;  %v1324_v12 = vrot.slane %v5262_v30, 1 }
 0x187   : > { %v5270_v35 = vpop.f32.mrf.mxu1  ;;  %v1335_v60 = vadd.f32 %v1333_v6, %v1180_v63  ;;  %v1184_v62 = vadd.f32 %v5258_v27, %v1046_v61 }
 0x188   : > { %v5264_v31 = vpop.f32.mrf.mxu0  ;;  %v1322_v57 = vrot.slane %v5270_v35, 1 }
 0x189   : > { %v5292_v49 = vpop.f32.mrf.mxu1  ;;  %v1187_v30 = vadd.f32 %v5264_v31, %v1049_v54 }
 0x18a   : > { %v5276_v28 = vpop.f32.mrf.mxu0  ;;  %v1325_v21 = vrot.slane %v5292_v49, 1 }
 0x18b   : > { %v5319_v34 = vpop.f32.mrf.mxu1  ;;  %v1185_v31 = vadd.f32 %v5276_v28, %v1047_v53 }
 0x18c   : > { %v1323_v19 = vrot.slane %v5319_v34, 1  ;;  %v1327_v27 = vsel %vm1326_vm3, %v1324_v12, %v1325_v21  ;;  %v1334_v34 = vsel %vm1326_vm3, %v1325_v21, %v1318_v41 }
 0x18d   : > { %v1341_v28 = vadd.f32 %v1327_v27, %v1186_v11  ;;  %v1342_v36 = vadd.f32 %v1334_v34, %v1187_v30  ;;  %v5481_v30 = vpop.permute.xlu0 %1832 }
 0x18e   : > { %v1328_v46 = vsel %vm1326_vm3, %v1323_v19, %v1324_v12  ;;  %6094 = vst [vmem:[#allocation16_spill] sm:$0xff] %v5481_v30 }
 0x18f   : > { %v1340_v43 = vadd.f32 %v1328_v46, %v1185_v31  ;;  %v5486_v31 = vpop.permute.xlu1 %1842 }
 0x190   : > { %6095 = vst [vmem:[#allocation17_spill] sm:$0xff] %v5486_v31 }
 0x19c   : > { %v5284_v45 = vpop.f32.mrf.mxu0 }
 0x19d   : > { %v5326_v33 = vpop.f32.mrf.mxu1  ;;  %v1475_v58 = vrot.slane %v5284_v45, 1 }
 0x19e   : > { %v5312_v25 = vpop.f32.mrf.mxu0  ;;  %v1629_v35 = vrot.slane %v5326_v33, 2 }
 0x19f   : > { %v5347_v1 = vpop.f32.mrf.mxu1  ;;  %v1473_v33 = vrot.slane %v5312_v25, 1 }
 0x1a0   : > { %v5333_v40 = vpop.f32.mrf.mxu0  ;;  %v1627_v2 = vrot.slane %v5347_v1, 2 }
 0x1a1   : > { %v5372_v32 = vpop.f32.mrf.mxu1  ;;  %v1476_v7 = vrot.slane %v5333_v40, 1  ;;  %v1336_v40 = vadd.f32 %v1332_v5, %v1181_v24 }
 0x1a2   : > { %v5355_v3 = vpop.f32.mrf.mxu0  ;;  %v1630_v23 = vrot.slane %v5372_v32, 2 }
 0x1a3   : > { %v5394_v51 = vpop.f32.mrf.mxu1  ;;  %v1474_v9 = vrot.slane %v5355_v3, 1  ;;  %v1485_v49 = vsel %vm1326_vm3, %v1475_v58, %v1476_v7  ;;  %v1330_v3 = vsel %vm1326_vm3, %v1321_v42, %v1322_v57 }
 0x1a4   : > { %v5380_v59 = vpop.f32.mrf.mxu0  ;;  %v1628_v32 = vrot.slane %v5394_v51, 2  ;;  %v1490_v17 = vadd.f32 %v1485_v49, %v1336_v40  ;;  %v1338_v37 = vadd.f32 %v1330_v3, %v1183_v13  ;;  %v1640_v50 = vsel %vm1635_vm4, %v1629_v35, %v1630_v23 }
 0x1a5   : > { %v5409_v10 = vpop.f32.mrf.mxu1  ;;  %v1486_v14 = vsel %vm1326_vm3, %v1474_v9, %v1475_v58  ;;  %v1479_v47 = vrot.slane %v5380_v59, 1  ;;  %v1487_v25 = vsel %vm1326_vm3, %v1473_v33, %v1474_v9  ;;  %v1329_v59 = vsel %vm1326_vm3, %v1322_v57, %v1323_v19  ;;  %v5471_v57 = vld [vmem:[%s6050_s3] ss:$0 sm:$0xff] }
 0x1a6   : > { %v5397_v18 = vpop.f32.mrf.mxu0  ;;  %v1489_v41 = vadd.f32 %v1486_v14, %v1335_v60  ;;  %v1641_v51 = vsel %vm1635_vm4, %v1628_v32, %v1629_v35  ;;  %v1496_v4 = vadd.f32 %v1487_v25, %v1342_v36  ;;  %v1645_v56 = vadd.f32 %v1640_v50, %v1490_v17 }
 0x1a7   : > { %v5426_v45 = vpop.f32.mrf.mxu1  ;;  %v1477_v48 = vrot.slane %v5397_v18, 1  ;;  %v1633_v44 = vrot.slane %v5409_v10, 2  ;;  %v1642_v24 = vsel %vm1635_vm4, %v1627_v2, %v1628_v32  ;;  %v1339_v9 = vadd.f32 %v1329_v59, %v1184_v62 }
 0x1a8   : > { %v4208_v8 = vpop.f32.mrf.mxu0  ;;  %v1631_v52 = vrot.slane %v5426_v45, 2  ;;  %v1644_v54 = vadd.f32 %v1641_v51, %v1489_v41  ;;  %v1651_v60 = vadd.f32 %v1642_v24, %v1496_v4 }
 0x1a9   : > { %v1480_v0 = vrot.slane %v4208_v8, 1  ;;  %v4232_v42 = vpop.f32.mrf.mxu1  ;;  %v1484_v55 = vsel %vm1326_vm3, %v1476_v7, %v1477_v48 }
 0x1aa   : > { %v1461_v15 = vpop.f32.mrf.mxu0  ;;  %v1634_v61 = vrot.slane %v4232_v42, 2  ;;  %v1491_v63 = vadd.f32 %v1484_v55, %v1337_v16  ;;  %v1639_v5 = vsel %vm1635_vm4, %v1630_v23, %v1631_v52 }
 0x1ab   : > { %v1481_v1 = vsel %vm1326_vm3, %v1479_v47, %v1480_v0  ;;  %v1478_v18 = vrot.slane %v1461_v15, 1  ;;  %v1615_v53 = vpop.f32.mrf.mxu1  ;;  %v1488_v7 = vsel %vm1326_vm3, %v1480_v0, %v1473_v33 }
 0x1ac   : > { %v1494_v13 = vadd.f32 %v1481_v1, %v1340_v43  ;;  %v1632_v16 = vrot.slane %v1615_v53, 2  ;;  %v1636_v40 = vsel %vm1635_vm4, %v1633_v44, %v1634_v61  ;;  %v1495_v35 = vadd.f32 %v1488_v7, %v1341_v28  ;;  %v5507_v1 = vpop.permute.xlu1 %1847 }
 0x1ad   : > { %v1482_v21 = vsel %vm1326_vm3, %v1478_v18, %v1479_v47  ;;  %v1483_v8 = vsel %vm1326_vm3, %v1477_v48, %v1478_v18  ;;  %v1646_v49 = vadd.f32 %v1639_v5, %v1491_v63  ;;  %v1643_v62 = vsel %vm1635_vm4, %v1634_v61, %v1627_v2  ;;  %v5496_v2 = vpop.permute.xlu0 %1837  ;;  %6097 = vst [vmem:[#allocation19_spill] sm:$0xff] %v5507_v1 }
 0x1ae   : > { %v1492_v27 = vadd.f32 %v1483_v8, %v1338_v37  ;;  %v1493_v34 = vadd.f32 %v1482_v21, %v1339_v9  ;;  %v1649_v33 = vadd.f32 %v1636_v40, %v1494_v13  ;;  %v1638_v14 = vsel %vm1635_vm4, %v1631_v52, %v1632_v16  ;;  %6096 = vst [vmem:[#allocation18_spill] sm:$0xff] %v5496_v2 }
 0x1af   : > { %v1650_v37 = vadd.f32 %v1643_v62, %v1495_v35  ;;  %v1637_v28 = vsel %vm1635_vm4, %v1632_v16, %v1633_v44  ;;  %v4660_v35 = vld [vmem:[#allocation7 + $0xb0] sm:$0xff]   ;;  %v4662_v62 = vld [vmem:[#allocation7 + $0xa8] sm:$0xff]  }
 0x1b0   : > { %v1647_v36 = vadd.f32 %v1638_v14, %v1492_v27  ;;  %v1648_v4 = vadd.f32 %v1637_v28, %v1493_v34  ;;  %v6103_v27 = vld [vmem:[#allocation15_spill] sm:$0xff]  ;;  %v4672_v28 = vld [vmem:[#allocation7 + $0x80] sm:$0xff]  }
 0x1b1   : > { %v5523_v21 = vpop.permute.xlu0 %1852 }
 0x1b2   : > { %6099 = vst [vmem:[#allocation21_spill] sm:$0xff] %v5523_v21 }
 0x1bc   : > { %v4251_v39 = vpop.f32.mrf.mxu0 }
 0x1bd   : > { %v1784_v20 = vrot.slane %v4251_v39, 3 }
 0x1be   : > { %v5449_v38 = vpop.f32.mrf.mxu0 }
 0x1bf   : > { %v1782_v17 = vrot.slane %v5449_v38, 3 }
 0x1c0   : > { %v4252_v22 = vpop.f32.mrf.mxu0 }
 0x1c1   : > { %v1785_v26 = vrot.slane %v4252_v22, 3 }
 0x1c2   : > { %v1754_v6 = vpop.f32.mrf.mxu0 }
 0x1c3   : > { %v1795_v10 = vsel %vm1790_vm5, %v1784_v20, %v1785_v26  ;;  %v1783_v12 = vrot.slane %v1754_v6, 3 }
 0x1c4   : > { %v1800_v11 = vadd.f32 %v1795_v10, %v1645_v56  ;;  %v4255_v58 = vpop.f32.mrf.mxu0  ;;  %v5521_v10 = vpop.permute.xlu1 %1857 }
 0x1c5   : > { %v1796_v19 = vsel %vm1790_vm5, %v1783_v12, %v1784_v20  ;;  %v1788_v47 = vrot.slane %v4255_v58, 3  ;;  %v1797_v56 = vsel %vm1790_vm5, %v1782_v17, %v1783_v12  ;;  %6098 = vst [vmem:[#allocation20_spill] sm:$0xff] %v5521_v10 }
 0x1c6   : > { %v1799_v23 = vadd.f32 %v1796_v19, %v1644_v54  ;;  %v1767_v45 = vpop.f32.mrf.mxu0  ;;  %v1815_v3 = vadd.f32 %v5471_v57, %v1800_v11  ;;  %v1806_v24 = vadd.f32 %v1797_v56, %v1651_v60  ;;  %v4685_v56 = vld [vmem:[#allocation7 + $0x150] sm:$0xff]  }
 0x1c7   : > { %v1786_v15 = vrot.slane %v1767_v45, 3 }
 0x1c8   : > { %v1814_v32 = vadd.f32 %v5471_v57, %v1799_v23  ;;  %v1823_v48 = vmax.f32 %v1815_v3, 0.0  ;;  %v4256_v46 = vpop.f32.mrf.mxu0  ;;  %v1821_v11 = vadd.f32 %v5471_v57, %v1806_v24  ;;  %v5536_v45 = vpop.permute.xlu1 %1867  ;;  %v4692_v24 = vld [vmem:[#allocation7 + $0x1b0] sm:$0xff]  }
 0x1c9   : > { %v1794_v0 = vsel %vm1790_vm5, %v1785_v26, %v1786_v15  ;;  %v1789_v39 = vrot.slane %v4256_v46, 3  ;;  %6100 = vst [vmem:[#allocation22_spill] sm:$0xff] %v5536_v45  ;;  %v5538_v3 = vpop.permute.xlu0 %1862  ;;  %v4666_v46 = vld [vmem:[#allocation7 + $0x98] sm:$0xff]  }
 0x1ca   : > { %v1822_v25 = vmax.f32 %v1814_v32, 0.0  ;;  %v1801_v50 = vadd.f32 %v1794_v0, %v1646_v49  ;;  %v1770_v42 = vpop.f32.mrf.mxu0  ;;  %v1871_v51 = vmul.f32 %v5496_v2, %v1823_v48  ;;  %v4661_v49 = vld [vmem:[#allocation7 + $0xf0] sm:$0xff]   ;;  %v1829_v23 = vmax.f32 %v1821_v11, 0.0  ;;  %6101 = vst [vmem:[#allocation23_spill] sm:$0xff] %v5538_v3  ;;  %v4664_v32 = vld [vmem:[#allocation7 + $0xa0] sm:$0xff]   ;;  %v4702_v11 = vld [vmem:[#allocation7 + $0x188] sm:$0xff]  }
 0x1cb   : > { %v1791_v41 = vsel %vm1790_vm5, %v1788_v47, %v1789_v39  ;;  %v1798_v52 = vsel %vm1790_vm5, %v1789_v39, %v1782_v17  ;;  %v1787_v38 = vrot.slane %v1770_v42, 3  ;;  %v4665_v48 = vld [vmem:[#allocation7 + $0xe0] sm:$0xff]   ;;  %v4667_v17 = vld [vmem:[#allocation7 + $0xd8] sm:$0xff]   ;;  %v4669_v0 = vld [vmem:[#allocation7 + $0xd0] sm:$0xff]  }
 0x1cc   : > { %v1870_v59 = vmul.f32 %v5481_v30, %v1822_v25  ;;  %v1816_v43 = vadd.f32 %v5471_v57, %v1801_v50  ;;  %v1804_v55 = vadd.f32 %v1791_v41, %v1649_v33  ;;  %v1805_v61 = vadd.f32 %v1798_v52, %v1650_v37  ;;  %v4670_v39 = vld [vmem:[#allocation7 + $0x88] sm:$0xff]   ;;  %v4673_v25 = vld [vmem:[#allocation7 + $0xc0] sm:$0xff]   ;;  %v4674_v50 = vld [vmem:[#allocation7 + $0x138] sm:$0xff]  }
 0x1cd   : > { %v1792_v18 = vsel %vm1790_vm5, %v1787_v38, %v1788_v47  ;;  %v1793_v22 = vsel %vm1790_vm5, %v1786_v15, %v1787_v38  ;;  %v4663_v15 = vld [vmem:[#allocation7 + $0xe8] sm:$0xff]   ;;  %v1877_v33 = vmul.f32 %v5536_v45, %v1829_v23  ;;  %v4668_v47 = vld [vmem:[#allocation7 + $0x90] sm:$0xff]   ;;  %v4675_v42 = vld [vmem:[#allocation7 + $0x178] sm:$0xff]  }
 0x1ce   : > { %v5513_v44 = vpack.c.bf16 %v1871_v51, %v1870_v59  ;;  %v1819_v53 = vadd.f32 %v5471_v57, %v1804_v55  ;;  %v1802_v20 = vadd.f32 %v1793_v22, %v1647_v36  ;;  %v1803_v26 = vadd.f32 %v1792_v18, %v1648_v4  ;;  %v4671_v37 = vld [vmem:[#allocation7 + $0xc8] sm:$0xff]   ;;  %v4676_v36 = vld [vmem:[#allocation7 + $0x130] sm:$0xff]   ;;  %v4680_v59 = vld [vmem:[#allocation7 + $0x120] sm:$0xff]  }
 0x1cf   : > { %v1824_v54 = vmax.f32 %v1816_v43, 0.0  ;;  %v1820_v13 = vadd.f32 %v5471_v57, %v1805_v61  ;;  %v4677_v41 = vld [vmem:[#allocation7 + $0x170] sm:$0xff]   ;;  %v4678_v52 = vld [vmem:[#allocation7 + $0x128] sm:$0xff]   ;;  %v4681_v43 = vld [vmem:[#allocation7 + $0x160] sm:$0xff]  }
 0x1d0   : > { %v1817_v63 = vadd.f32 %v5471_v57, %v1802_v20  ;;  %4273 = vmatprep.mubr.bf16.mxu1 %v5513_v44  ;;  %4297 = vmatprep.mubr.bf16.mxu0 %v5513_v44  ;;  %v1818_v5 = vadd.f32 %v5471_v57, %v1803_v26  ;;  %v1827_v6 = vmax.f32 %v1819_v53, 0.0  ;;  %v6102_v57 = vld [vmem:[#allocation14_spill] sm:$0xff]  ;;  %v4679_v38 = vld [vmem:[#allocation7 + $0x168] sm:$0xff]   ;;  %v4682_v51 = vld [vmem:[#allocation7 + $0x118] sm:$0xff]  }
 0x1d1   : > { %v1872_v8 = vmul.f32 %v5486_v31, %v1824_v54  ;;  %v1828_v40 = vmax.f32 %v1820_v13, 0.0  ;;  %v4683_v55 = vld [vmem:[#allocation7 + $0x158] sm:$0xff]   ;;  %v4684_v4 = vld [vmem:[#allocation7 + $0x110] sm:$0xff]   ;;  %v4686_v18 = vld [vmem:[#allocation7 + $0x108] sm:$0xff]  }
 0x1d2   : > { %v1825_v7 = vmax.f32 %v1817_v63, 0.0  ;;  %v1826_v12 = vmax.f32 %v1818_v5, 0.0  ;;  %v1875_v58 = vmul.f32 %v5521_v10, %v1827_v6  ;;  %v4687_v22 = vld [vmem:[#allocation7 + $0x148] sm:$0xff]   ;;  %v4688_v61 = vld [vmem:[#allocation7 + $0x100] sm:$0xff]   ;;  %v4690_v20 = vld [vmem:[#allocation7 + $0x1b8] sm:$0xff]  }
 0x1d3   : > { %v1876_v34 = vmul.f32 %v5538_v3, %v1828_v40  ;;  %v4689_v53 = vld [vmem:[#allocation7 + $0x140] sm:$0xff]   ;;  %v4691_v26 = vld [vmem:[#allocation7 + $0x1f8] sm:$0xff]   ;;  %v4693_v54 = vld [vmem:[#allocation7 + $0x1f0] sm:$0xff]  }
 0x1d4   : > { %v1873_v16 = vmul.f32 %v5507_v1, %v1825_v7  ;;  %v1874_v9 = vmul.f32 %v5523_v21, %v1826_v12  ;;  %v4694_v63 = vld [vmem:[#allocation7 + $0x1a8] sm:$0xff]   ;;  %v4696_v6 = vld [vmem:[#allocation7 + $0x1a0] sm:$0xff]   ;;  %v4698_v13 = vld [vmem:[#allocation7 + $0x198] sm:$0xff]  }
 0x1d5   : > { %v5546_v14 = vpack.c.bf16 %v1877_v33, %v1876_v34  ;;  %v4695_v5 = vld [vmem:[#allocation7 + $0x1e8] sm:$0xff]   ;;  %v4697_v7 = vld [vmem:[#allocation7 + $0x1e0] sm:$0xff]   ;;  %v4699_v12 = vld [vmem:[#allocation7 + $0x1d8] sm:$0xff]  }
 0x1d6   : > { %v5530_v60 = vpack.c.bf16 %v1873_v16, %v1872_v8  ;;  %v5532_v19 = vpack.c.bf16 %v1875_v58, %v1874_v9  ;;  %v4700_v8 = vld [vmem:[#allocation7 + $0x190] sm:$0xff]   ;;  %v4703_v58 = vld [vmem:[#allocation7 + $0x1c8] sm:$0xff]   ;;  %v4704_v9 = vld [vmem:[#allocation7 + $0x180] sm:$0xff]  }
 0x1d7   : > { %v4701_v16 = vld [vmem:[#allocation7 + $0x1d0] sm:$0xff]   ;;  %v4705_v40 = vld [vmem:[#allocation7 + $0x1c0] sm:$0xff]   ;;  %v4708_v23 = vld [vmem:[#allocation7 + $0x228] sm:$0xff]  }
 0x1d8   : > { %4274 = vmatmul.mubr.bf16.vlgmr.msra.gmra.mxu1 %v5530_v60  ;;  %4298 = vmatmul.mubr.bf16.vlgmr.msra.gmra.mxu0 %v5530_v60  ;;  %v4711_v34 = vld [vmem:[#allocation7 + $0x210] sm:$0xff]  }
 0x1d9   : > { %4306 = vmatpush3.bf16.msra.mxu1 %v6102_v57  ;;  %4330 = vmatpush3.bf16.msra.mxu0 %v6103_v27  ;;  %v4709_v57 = vld [vmem:[#allocation7 + $0x220] sm:$0xff]   ;;  %v4710_v27 = vld [vmem:[#allocation7 + $0x218] sm:$0xff]  }
 0x1da   : > { %4277 = vmatprep.mubr.bf16.mxu1 %v5532_v19  ;;  %4301 = vmatprep.mubr.bf16.mxu0 %v5532_v19 }
 0x1db   : > { %4307 = vmatprep.subr.bf16.mxu1 %v4660_v35  ;;  %4331 = vmatprep.subr.bf16.mxu0 %v4661_v49 }
 0x1dd   : > { %4308 = vmatpush3.bf16.msra.mxu1 %v4660_v35  ;;  %4332 = vmatpush3.bf16.msra.mxu0 %v4661_v49  ;;  %v4706_v35 = vld [vmem:[#allocation7 + $0x238] sm:$0xff]   ;;  %v4707_v49 = vld [vmem:[#allocation7 + $0x230] sm:$0xff]  }
 0x1de   : > { %4309 = vmatprep.subr.bf16.mxu1 %v4662_v62  ;;  %4333 = vmatprep.subr.bf16.mxu0 %v4663_v15 }
 0x1e0   : > { %4278 = vmatmul.mubr.bf16.gmra.mxu1 %v5546_v14  ;;  %4302 = vmatmul.mubr.bf16.gmra.mxu0 %v5546_v14 }
 0x1e1   : > { %4310 = vmatpush3.bf16.msra.mxu1 %v4662_v62  ;;  %4334 = vmatpush3.bf16.msra.mxu0 %v4663_v15  ;;  %v4712_v62 = vld [vmem:[#allocation7 + $0x208] sm:$0xff]   ;;  %v4713_v15 = vld [vmem:[#allocation7 + $0x200] sm:$0xff]  }
 0x1e2   : > { %4321 = vmatprep.mubr.bf16.mxu1 %v5513_v44  ;;  %4345 = vmatprep.mubr.bf16.mxu0 %v5513_v44 }
 0x1e3   : > { %4311 = vmatprep.subr.bf16.mxu1 %v4664_v32  ;;  %4335 = vmatprep.subr.bf16.mxu0 %v4665_v48 }
 0x1e5   : > { %4312 = vmatpush3.bf16.msra.mxu1 %v4664_v32  ;;  %4336 = vmatpush3.bf16.msra.mxu0 %v4665_v48 }
 0x1e6   : > { %4313 = vmatprep.subr.bf16.mxu1 %v4666_v46  ;;  %4337 = vmatprep.subr.bf16.mxu0 %v4667_v17 }
 0x1e9   : > { %4314 = vmatpush3.bf16.msra.mxu1 %v4666_v46  ;;  %4338 = vmatpush3.bf16.msra.mxu0 %v4667_v17 }
 0x1ea   : > { %4315 = vmatprep.subr.bf16.mxu1 %v4668_v47  ;;  %4339 = vmatprep.subr.bf16.mxu0 %v4669_v0 }
 0x1ed   : > { %4316 = vmatpush3.bf16.msra.mxu1 %v4668_v47  ;;  %4340 = vmatpush3.bf16.msra.mxu0 %v4669_v0 }
 0x1ee   : > { %4317 = vmatprep.subr.bf16.mxu1 %v4670_v39  ;;  %4341 = vmatprep.subr.bf16.mxu0 %v4671_v37 }
 0x1f1   : > { %4318 = vmatpush3.bf16.msra.mxu1 %v4670_v39  ;;  %4342 = vmatpush3.bf16.msra.mxu0 %v4671_v37 }
 0x1f2   : > { %4319 = vmatprep.subr.bf16.mxu1 %v4672_v28  ;;  %4343 = vmatprep.subr.bf16.mxu0 %v4673_v25 }
 0x1f5   : > { %4320 = vmatpush3.bf16.msra.mxu1 %v4672_v28  ;;  %4344 = vmatpush3.bf16.msra.mxu0 %v4673_v25 }
 0x1f6   : > { %4353 = vmatprep.subr.bf16.mxu1 %v4674_v50  ;;  %4377 = vmatprep.subr.bf16.mxu0 %v4675_v42 }
 0x1f8   : > { %4322 = vmatmul.mubr.bf16.vlgmr.msra.gmra.mxu1 %v5530_v60  ;;  %4346 = vmatmul.mubr.bf16.vlgmr.msra.gmra.mxu0 %v5530_v60 }
 0x1f9   : > { %4325 = vmatprep.mubr.bf16.mxu1 %v5532_v19  ;;  %4349 = vmatprep.mubr.bf16.mxu0 %v5532_v19 }
 0x1fa   : > { %4354 = vmatpush3.bf16.msra.mxu1 %v4674_v50  ;;  %4378 = vmatpush3.bf16.msra.mxu0 %v4675_v42 }
 0x1fb   : > { %4355 = vmatprep.subr.bf16.mxu1 %v4676_v36  ;;  %4379 = vmatprep.subr.bf16.mxu0 %v4677_v41 }
 0x1fe   : > { %4356 = vmatpush3.bf16.msra.mxu1 %v4676_v36  ;;  %4380 = vmatpush3.bf16.msra.mxu0 %v4677_v41 }
 0x1ff   : > { %4357 = vmatprep.subr.bf16.mxu1 %v4678_v52  ;;  %4381 = vmatprep.subr.bf16.mxu0 %v4679_v38 }
 0x200   : > { %4326 = vmatmul.mubr.bf16.gmra.mxu1 %v5546_v14  ;;  %4350 = vmatmul.mubr.bf16.gmra.mxu0 %v5546_v14 }
 0x201   : > { %4369 = vmatprep.mubr.bf16.mxu1 %v5513_v44  ;;  %4393 = vmatprep.mubr.bf16.mxu0 %v5513_v44 }
 0x202   : > { %4358 = vmatpush3.bf16.msra.mxu1 %v4678_v52  ;;  %4382 = vmatpush3.bf16.msra.mxu0 %v4679_v38 }
 0x203   : > { %4359 = vmatprep.subr.bf16.mxu1 %v4680_v59  ;;  %4383 = vmatprep.subr.bf16.mxu0 %v4681_v43 }
 0x206   : > { %4360 = vmatpush3.bf16.msra.mxu1 %v4680_v59  ;;  %4384 = vmatpush3.bf16.msra.mxu0 %v4681_v43 }
 0x207   : > { %4361 = vmatprep.subr.bf16.mxu1 %v4682_v51  ;;  %4385 = vmatprep.subr.bf16.mxu0 %v4683_v55 }
 0x20a   : > { %4362 = vmatpush3.bf16.msra.mxu1 %v4682_v51  ;;  %4386 = vmatpush3.bf16.msra.mxu0 %v4683_v55 }
 0x20b   : > { %4363 = vmatprep.subr.bf16.mxu1 %v4684_v4  ;;  %4387 = vmatprep.subr.bf16.mxu0 %v4685_v56 }
 0x20e   : > { %4364 = vmatpush3.bf16.msra.mxu1 %v4684_v4  ;;  %4388 = vmatpush3.bf16.msra.mxu0 %v4685_v56  ;;  %v6065_v4 = vmov 0.0  }
 0x20f   : > { %4365 = vmatprep.subr.bf16.mxu1 %v4686_v18  ;;  %4389 = vmatprep.subr.bf16.mxu0 %v4687_v22 }
 0x212   : > { %4366 = vmatpush3.bf16.msra.mxu1 %v4686_v18  ;;  %4390 = vmatpush3.bf16.msra.mxu0 %v4687_v22 }
 0x213   : > { %4367 = vmatprep.subr.bf16.mxu1 %v4688_v61  ;;  %4391 = vmatprep.subr.bf16.mxu0 %v4689_v53 }
 0x216   : > { %4368 = vmatpush3.bf16.msra.mxu1 %v4688_v61  ;;  %4392 = vmatpush3.bf16.msra.mxu0 %v4689_v53 }
 0x217   : > { %4401 = vmatprep.subr.bf16.mxu1 %v4690_v20  ;;  %4425 = vmatprep.subr.bf16.mxu0 %v4691_v26 }
 0x219   : > { %4370 = vmatmul.mubr.bf16.vlgmr.msra.gmra.mxu1 %v5530_v60  ;;  %4394 = vmatmul.mubr.bf16.vlgmr.msra.gmra.mxu0 %v5530_v60 }
 0x21a   : > { %4373 = vmatprep.mubr.bf16.mxu1 %v5532_v19  ;;  %4397 = vmatprep.mubr.bf16.mxu0 %v5532_v19 }
 0x21b   : > { %4402 = vmatpush3.bf16.msra.mxu1 %v4690_v20  ;;  %4426 = vmatpush3.bf16.msra.mxu0 %v4691_v26 }
 0x21c   : > { %4403 = vmatprep.subr.bf16.mxu1 %v4692_v24  ;;  %4427 = vmatprep.subr.bf16.mxu0 %v4693_v54 }
 0x21f   : > { %4404 = vmatpush3.bf16.msra.mxu1 %v4692_v24  ;;  %4428 = vmatpush3.bf16.msra.mxu0 %v4693_v54 }
 0x220   : > { %4405 = vmatprep.subr.bf16.mxu1 %v4694_v63  ;;  %4429 = vmatprep.subr.bf16.mxu0 %v4695_v5 }
 0x221   : > { %4374 = vmatmul.mubr.bf16.gmra.mxu1 %v5546_v14  ;;  %4398 = vmatmul.mubr.bf16.gmra.mxu0 %v5546_v14 }
 0x222   : > { %4417 = vmatprep.mubr.bf16.mxu1 %v5513_v44  ;;  %4441 = vmatprep.mubr.bf16.mxu0 %v5513_v44 }
 0x223   : > { %4406 = vmatpush3.bf16.msra.mxu1 %v4694_v63  ;;  %4430 = vmatpush3.bf16.msra.mxu0 %v4695_v5 }
 0x224   : > { %4407 = vmatprep.subr.bf16.mxu1 %v4696_v6  ;;  %4431 = vmatprep.subr.bf16.mxu0 %v4697_v7 }
 0x227   : > { %4408 = vmatpush3.bf16.msra.mxu1 %v4696_v6  ;;  %4432 = vmatpush3.bf16.msra.mxu0 %v4697_v7 }
 0x228   : > { %4409 = vmatprep.subr.bf16.mxu1 %v4698_v13  ;;  %4433 = vmatprep.subr.bf16.mxu0 %v4699_v12 }
 0x22b   : > { %4410 = vmatpush3.bf16.msra.mxu1 %v4698_v13  ;;  %4434 = vmatpush3.bf16.msra.mxu0 %v4699_v12 }
 0x22c   : > { %4411 = vmatprep.subr.bf16.mxu1 %v4700_v8  ;;  %4435 = vmatprep.subr.bf16.mxu0 %v4701_v16 }
 0x22f   : > { %4412 = vmatpush3.bf16.msra.mxu1 %v4700_v8  ;;  %4436 = vmatpush3.bf16.msra.mxu0 %v4701_v16 }
 0x230   : > { %4413 = vmatprep.subr.bf16.mxu1 %v4702_v11  ;;  %4437 = vmatprep.subr.bf16.mxu0 %v4703_v58 }
 0x233   : > { %4414 = vmatpush3.bf16.msra.mxu1 %v4702_v11  ;;  %4438 = vmatpush3.bf16.msra.mxu0 %v4703_v58 }
 0x234   : > { %4415 = vmatprep.subr.bf16.mxu1 %v4704_v9  ;;  %4439 = vmatprep.subr.bf16.mxu0 %v4705_v40 }
 0x237   : > { %4416 = vmatpush3.bf16.msra.mxu1 %v4704_v9  ;;  %4440 = vmatpush3.bf16.msra.mxu0 %v4705_v40 }
 0x238   : > { %4449 = vmatprep.subr.bf16.mxu1 %v4706_v35  ;;  %4473 = vmatprep.subr.mxu0 %v6065_v4 }
 0x23a   : > { %4418 = vmatmul.mubr.bf16.vlgmr.msra.gmra.mxu1 %v5530_v60  ;;  %4442 = vmatmul.mubr.bf16.vlgmr.msra.gmra.mxu0 %v5530_v60 }
 0x23b   : > { %4421 = vmatprep.mubr.bf16.mxu1 %v5532_v19  ;;  %4445 = vmatprep.mubr.bf16.mxu0 %v5532_v19 }
 0x23c   : > { %4450 = vmatpush3.bf16.msra.mxu1 %v4706_v35 }
 0x23d   : > { %4451 = vmatprep.subr.bf16.mxu1 %v4707_v49 }
 0x240   : > { %4452 = vmatpush3.bf16.msra.mxu1 %v4707_v49 }
 0x241   : > { %4453 = vmatprep.subr.bf16.mxu1 %v4708_v23 }
 0x242   : > { %4422 = vmatmul.mubr.bf16.gmra.mxu1 %v5546_v14  ;;  %4446 = vmatmul.mubr.bf16.gmra.mxu0 %v5546_v14 }
 0x243   : > { %4465 = vmatprep.mubr.bf16.mxu1 %v5513_v44 }
 0x244   : > { %4454 = vmatpush3.bf16.msra.mxu1 %v4708_v23 }
 0x245   : > { %4455 = vmatprep.subr.bf16.mxu1 %v4709_v57 }
 0x248   : > { %4456 = vmatpush3.bf16.msra.mxu1 %v4709_v57 }
 0x249   : > { %4457 = vmatprep.subr.bf16.mxu1 %v4710_v27 }
 0x24c   : > { %4458 = vmatpush3.bf16.msra.mxu1 %v4710_v27 }
 0x24d   : > { %4459 = vmatprep.subr.bf16.mxu1 %v4711_v34 }
 0x250   : > { %4460 = vmatpush3.bf16.msra.mxu1 %v4711_v34 }
 0x251   : > { %4461 = vmatprep.subr.bf16.mxu1 %v4712_v62 }
 0x254   : > { %4462 = vmatpush3.bf16.msra.mxu1 %v4712_v62 }
 0x255   : > { %4463 = vmatprep.subr.bf16.mxu1 %v4713_v15 }
 0x258   : > { %4464 = vmatpush3.bf16.msra.mxu1 %v4713_v15 }
 0x259   : > { %4480 = vmatprep.subr.mxu1 %v6065_v4 }
 0x25b   : > { %4466 = vmatmul.mubr.bf16.vlgmr.msra.gmra.mxu1 %v5530_v60 }
 0x25c   : > { %4469 = vmatprep.mubr.bf16.mxu1 %v5532_v19 }
 0x263   : > { %4470 = vmatmul.mubr.bf16.gmra.mxu1 %v5546_v14 }
 0x298   : > { %v5578_v44 = vpop.f32.mrf.mxu1  ;;  %v5584_v48 = vpop.f32.mrf.mxu0 }
 0x299   : > { %v2013_v57 = vrot.slane %v5578_v44, 5  ;;  %v2167_v34 = vrot.slane %v5584_v48, 6 }
 0x29a   : > { %v5580_v33 = vpop.f32.mrf.mxu1  ;;  %v5588_v17 = vpop.f32.mrf.mxu0 }
 0x29c   : > { %v5582_v32 = vpop.f32.mrf.mxu1  ;;  %v5592_v0 = vpop.f32.mrf.mxu0 }
 0x29d   : > { %v2014_v40 = vrot.slane %v5582_v32, 5  ;;  %v2168_v35 = vrot.slane %v5592_v0, 6  ;;  %v2011_v32 = vrot.slane %v5580_v33, 5  ;;  %v2165_v0 = vrot.slane %v5588_v17, 6 }
 0x29e   : > { %v5586_v46 = vpop.f32.mrf.mxu1  ;;  %v5596_v19 = vpop.f32.mrf.mxu0 }
 0x29f   : > { %v2012_v27 = vrot.slane %v5586_v46, 5  ;;  %v2166_v62 = vrot.slane %v5596_v19, 6  ;;  %v2023_v44 = vsel %vm569_vm0, %v2013_v57, %v2014_v40  ;;  %v2177_v48 = vsel %vm724_vm1, %v2167_v34, %v2168_v35 }
 0x2a0   : > { %v5590_v47 = vpop.f32.mrf.mxu1  ;;  %v5600_v39 = vpop.f32.mrf.mxu0 }
 0x2a1   : > { %v2024_v33 = vsel %vm569_vm0, %v2012_v27, %v2013_v57  ;;  %v2025_v17 = vsel %vm569_vm0, %v2011_v32, %v2012_v27  ;;  %v2178_v10 = vsel %vm724_vm1, %v2166_v62, %v2167_v34  ;;  %v2185_v34 = vadd.f32 %v2177_v48, %v2023_v44 }
 0x2a2   : > { %v5594_v60 = vpop.f32.mrf.mxu1  ;;  %v5604_v28 = vpop.f32.mrf.mxu0 }
 0x2a3   : > { %v2015_v15 = vrot.slane %v5594_v60, 5  ;;  %v2169_v4 = vrot.slane %v5604_v28, 6 }
 0x2a4   : > { %v5598_v14 = vpop.f32.mrf.mxu1  ;;  %v5608_v50 = vpop.f32.mrf.mxu0 }
 0x2a5   : > { %v2018_v45 = vrot.slane %v5598_v14, 5  ;;  %v2172_v3 = vrot.slane %v5608_v50, 6  ;;  %v2017_v14 = vrot.slane %v5590_v47, 5  ;;  %v2171_v50 = vrot.slane %v5600_v39, 6 }
 0x2a6   : > { %v5602_v37 = vpop.f32.mrf.mxu1  ;;  %v5612_v36 = vpop.f32.mrf.mxu0  ;;  %v2176_v21 = vsel %vm724_vm1, %v2168_v35, %v2169_v4 }
 0x2a7   : > { %v2016_v46 = vrot.slane %v5602_v37, 5  ;;  %v2170_v60 = vrot.slane %v5612_v36, 6  ;;  %v2179_v37 = vsel %vm724_vm1, %v2165_v0, %v2166_v62  ;;  %v2022_v36 = vsel %vm569_vm0, %v2014_v40, %v2015_v15 }
 0x2a8   : > { %v2019_v57 = vsel %vm569_vm0, %v2017_v14, %v2018_v45  ;;  %v2026_v47 = vsel %vm569_vm0, %v2018_v45, %v2011_v32  ;;  %v2173_v39 = vsel %vm724_vm1, %v2171_v50, %v2172_v3  ;;  %v2180_v27 = vsel %vm724_vm1, %v2172_v3, %v2165_v0 }
 0x2a9   : > { %v2021_v62 = vsel %vm569_vm0, %v2015_v15, %v2016_v46  ;;  %v2175_v40 = vsel %vm724_vm1, %v2169_v4, %v2170_v60  ;;  %v2183_v45 = vadd.f32 %v2179_v37, %v2025_v17  ;;  %v2184_v32 = vadd.f32 %v2178_v10, %v2024_v33 }
 0x2aa   : > { %v2186_v2 = vadd.f32 %v2176_v21, %v2022_v36  ;;  %v2182_v3 = vadd.f32 %v2180_v27, %v2026_v47  ;;  %v2174_v4 = vsel %vm724_vm1, %v2170_v60, %v2171_v50  ;;  %v2187_v48 = vadd.f32 %v2175_v40, %v2021_v62 }
 0x2b8   : > { %v5606_v25 = vpop.f32.mrf.mxu1  ;;  %v5616_v52 = vpop.f32.mrf.mxu0 }
 0x2b9   : > { %v2321_v0 = vrot.slane %v5606_v25, 7 }
 0x2ba   : > { %v5610_v42 = vpop.f32.mrf.mxu1  ;;  %v5620_v59 = vpop.f32.mrf.mxu0 }
 0x2bb   : > { %v2319_v15 = vrot.slane %v5610_v42, 7  ;;  %v2473_v50 = vrot.slane %v5620_v59, 7 }
 0x2bc   : > { %v5614_v41 = vpop.f32.mrf.mxu1  ;;  %v5624_v51 = vpop.f32.mrf.mxu0 }
 0x2bd   : > { %v2322_v30 = vrot.slane %v5614_v41, 7  ;;  %v2476_v21 = vrot.slane %v5624_v51, 7 }
 0x2be   : > { %v5618_v38 = vpop.f32.mrf.mxu1  ;;  %v5630_v56 = vpop.f32.mrf.mxu0 }
 0x2bf   : > { %v2320_v35 = vrot.slane %v5618_v38, 7  ;;  %v2020_v38 = vsel %vm569_vm0, %v2016_v46, %v2017_v14  ;;  %v2331_v46 = vsel %vm879_vm2, %v2321_v0, %v2322_v30  ;;  %v2475_v14 = vrot.slane %v5616_v52, 7 }
 0x2c0   : > { %v5622_v43 = vpop.f32.mrf.mxu1  ;;  %v5634_v22 = vpop.f32.mrf.mxu0  ;;  %v2188_v51 = vadd.f32 %v2174_v4, %v2020_v38  ;;  %v2474_v37 = vrot.slane %v5630_v56, 7  ;;  %v2339_v52 = vadd.f32 %v2331_v46, %v2185_v34 }
 0x2c1   : > { %v2332_v41 = vsel %vm879_vm2, %v2320_v35, %v2321_v0  ;;  %v2333_v25 = vsel %vm879_vm2, %v2319_v15, %v2320_v35  ;;  %v2325_v60 = vrot.slane %v5622_v43, 7  ;;  %v2479_v40 = vrot.slane %v5634_v22, 7 }
 0x2c2   : > { %v5626_v55 = vpop.f32.mrf.mxu1  ;;  %v5638_v53 = vpop.f32.mrf.mxu0  ;;  %v2337_v43 = vadd.f32 %v2333_v25, %v2183_v45  ;;  %v2338_v47 = vadd.f32 %v2332_v41, %v2184_v32  ;;  %v2486_v34 = vsel %vm879_vm2, %v2474_v37, %v2475_v14 }
 0x2c3   : > { %v2477_v42 = vrot.slane %v5638_v53, 7  ;;  %v2323_v17 = vrot.slane %v5626_v55, 7 }
 0x2c4   : > { %v5632_v18 = vpop.f32.mrf.mxu1  ;;  %v5642_v26 = vpop.f32.mrf.mxu0  ;;  %v2491_v0 = vadd.f32 %v2486_v34, %v2337_v43 }
 0x2c5   : > { %v2326_v10 = vrot.slane %v5632_v18, 7  ;;  %v2484_v59 = vsel %vm879_vm2, %v2476_v21, %v2477_v42  ;;  %v2480_v27 = vrot.slane %v5642_v26, 7 }
 0x2c6   : > { %v5636_v61 = vpop.f32.mrf.mxu1  ;;  %v5646_v54 = vpop.f32.mrf.mxu0  ;;  %v2493_v26 = vadd.f32 %v2484_v59, %v2339_v52 }
 0x2c7   : > { %v2324_v18 = vrot.slane %v5636_v61, 7  ;;  %v2327_v53 = vsel %vm879_vm2, %v2325_v60, %v2326_v10  ;;  %v2478_v55 = vrot.slane %v5646_v54, 7  ;;  %v2485_v61 = vsel %vm879_vm2, %v2475_v14, %v2476_v21 }
 0x2c8   : > { %v2481_v25 = vsel %vm879_vm2, %v2479_v40, %v2480_v27 }
 0x2c9   : > { %v2328_v62 = vsel %vm879_vm2, %v2324_v18, %v2325_v60  ;;  %v2329_v54 = vsel %vm879_vm2, %v2323_v17, %v2324_v18  ;;  %v2483_v21 = vsel %vm879_vm2, %v2477_v42, %v2478_v55 }
 0x2ca   : > { %v2341_v38 = vadd.f32 %v2329_v54, %v2187_v48  ;;  %v2342_v4 = vadd.f32 %v2328_v62, %v2188_v51 }
 0x2d9   : > { %v5640_v20 = vpop.f32.mrf.mxu1  ;;  %v5650_v5 = vpop.f32.mrf.mxu0 }
 0x2db   : > { %v5644_v24 = vpop.f32.mrf.mxu1  ;;  %v5654_v7 = vpop.f32.mrf.mxu0 }
 0x2dc   : > { %v2765_v18 = vrot.slane %v5654_v7, 1 }
 0x2dd   : > { %v5648_v63 = vpop.f32.mrf.mxu1  ;;  %v5658_v12 = vpop.f32.mrf.mxu0 }
 0x2df   : > { %v5652_v6 = vpop.f32.mrf.mxu1  ;;  %v5662_v16 = vpop.f32.mrf.mxu0 }
 0x2e0   : > { %v2766_v41 = vrot.slane %v5662_v16, 1  ;;  %v2629_v16 = vadd.f32 %v5640_v20, %v2491_v0 }
 0x2e1   : > { %v5656_v13 = vpop.f32.mrf.mxu1  ;;  %v5666_v58 = vpop.f32.mrf.mxu0 }
 0x2e2   : > { %v2771_v7 = vrot.slane %v5666_v58, 1 }
 0x2e3   : > { %v5660_v8 = vpop.f32.mrf.mxu1  ;;  %v5672_v49 = vpop.f32.mrf.mxu0 }
 0x2e4   : > { %v2769_v48 = vrot.slane %v5672_v49, 1  ;;  %v2631_v62 = vadd.f32 %v5660_v8, %v2493_v26 }
 0x2e5   : > { %v5664_v11 = vpop.f32.mrf.mxu1  ;;  %v5692_v19 = vpop.f32.mrf.mxu0 }
 0x2e7   : > { %v5668_v9 = vpop.f32.mrf.mxu1  ;;  %v5723_v1 = vpop.f32.mrf.mxu0 }
 0x2e8   : > { %v2770_v43 = vrot.slane %v5723_v1, 1 }
 0x2fa   : > { %v5674_v23 = vpop.f32.mrf.mxu1  ;;  %v5730_v44 = vpop.f32.mrf.mxu0 }
 0x2fb   : > { %v2921_v54 = vrot.slane %v5674_v23, 1 }
 0x2fc   : > { %v5694_v28 = vpop.f32.mrf.mxu1  ;;  %v5753_v36 = vpop.f32.mrf.mxu0 }
 0x2fd   : > { %6104 = vst [vmem:[#allocation14_spill] sm:$0xff] %v5694_v28  ;;  %v2181_v28 = vadd.f32 %v2173_v39, %v2019_v57  ;;  %v2334_v57 = vsel %vm879_vm2, %v2326_v10, %v2319_v15  ;;  %v2330_v39 = vsel %vm879_vm2, %v2322_v30, %v2323_v17  ;;  %v2492_v15 = vadd.f32 %v2485_v61, %v2338_v47 }
 0x2fe   : > { %v5725_v31 = vpop.f32.mrf.mxu1  ;;  %v2336_v45 = vadd.f32 %v2334_v57, %v2182_v3  ;;  %v5776_v32 = vpop.f32.mrf.mxu0  ;;  %v2487_v30 = vsel %vm879_vm2, %v2473_v50, %v2474_v37  ;;  %v2340_v10 = vadd.f32 %v2330_v39, %v2186_v2  ;;  %v2768_v3 = vrot.slane %v5658_v12, 1 }
 0x2ff   : > { %v2335_v35 = vadd.f32 %v2327_v53, %v2181_v28  ;;  %v2488_v28 = vsel %vm879_vm2, %v2480_v27, %v2473_v50  ;;  %v2482_v2 = vsel %vm879_vm2, %v2478_v55, %v2479_v40  ;;  %v2767_v17 = vrot.slane %v5650_v5, 1 }
 0x300   : > { %v5743_v33 = vpop.f32.mrf.mxu1  ;;  %v2490_v60 = vadd.f32 %v2487_v30, %v2336_v45  ;;  %v5793_v42 = vpop.f32.mrf.mxu0  ;;  %v2772_v12 = vrot.slane %v5692_v19, 1  ;;  %v2494_v51 = vadd.f32 %v2483_v21, %v2340_v10  ;;  %v2495_v50 = vadd.f32 %v2482_v2, %v2341_v38 }
 0x301   : > { %v2489_v46 = vadd.f32 %v2488_v28, %v2335_v35  ;;  %v2496_v37 = vadd.f32 %v2481_v25, %v2342_v4  ;;  %v2777_v57 = vsel %vm1326_vm3, %v2767_v17, %v2768_v3  ;;  %v2779_v5 = vsel %vm1326_vm3, %v2765_v18, %v2766_v41 }
 0x302   : > { %v5764_v56 = vpop.f32.mrf.mxu1  ;;  %v2628_v49 = vadd.f32 %v5652_v6, %v2490_v60  ;;  %v2630_v19 = vadd.f32 %v5648_v63, %v2492_v15  ;;  %v2778_v20 = vsel %vm1326_vm3, %v2766_v41, %v2767_v17  ;;  %v5812_v47 = vpop.f32.mrf.mxu0  ;;  %v2773_v6 = vsel %vm1326_vm3, %v2771_v7, %v2772_v12 }
 0x303   : > { %v2627_v14 = vadd.f32 %v5644_v24, %v2489_v46  ;;  %v2776_v24 = vsel %vm1326_vm3, %v2768_v3, %v2769_v48  ;;  %v2634_v55 = vadd.f32 %v5664_v11, %v2496_v37  ;;  %v2922_v61 = vrot.slane %v5725_v31, 1 }
 0x304   : > { %v5782_v22 = vpop.f32.mrf.mxu1  ;;  %v2920_v58 = vrot.slane %v5743_v33, 1  ;;  %v2783_v63 = vadd.f32 %v2777_v57, %v2629_v16  ;;  %v2633_v59 = vadd.f32 %v5656_v13, %v2495_v50  ;;  %v2780_v39 = vsel %vm1326_vm3, %v2772_v12, %v2765_v18  ;;  %v5829_v13 = vpop.f32.mrf.mxu0  ;;  %v6105_v23 = vld [vmem:[#allocation14_spill] sm:$0xff] }
 0x305   : > { %v2781_v52 = vadd.f32 %v2779_v5, %v2627_v14  ;;  %v2782_v1 = vadd.f32 %v2778_v20, %v2628_v49  ;;  %v2632_v11 = vadd.f32 %v5668_v9, %v2494_v51  ;;  %v2784_v40 = vadd.f32 %v2776_v24, %v2630_v19 }
 0x306   : > { %v4424_v53 = vpop.f32.mrf.mxu1  ;;  %v2787_v34 = vadd.f32 %v2773_v6, %v2633_v59  ;;  %v2774_v31 = vsel %vm1326_vm3, %v2770_v43, %v2771_v7  ;;  %v2775_v33 = vsel %vm1326_vm3, %v2769_v48, %v2770_v43  ;;  %v2788_v45 = vadd.f32 %v2780_v39, %v2634_v55  ;;  %v4448_v60 = vpop.f32.mrf.mxu0 }
 0x307   : > { %v2931_v0 = vsel %vm1326_vm3, %v2921_v54, %v2922_v61  ;;  %v2932_v8 = vsel %vm1326_vm3, %v2920_v58, %v2921_v54  ;;  %v2923_v9 = vrot.slane %v5782_v22, 1  ;;  %v2919_v15 = vrot.slane %v6105_v23, 1 }
 0x308   : > { %v2907_v27 = vpop.f32.mrf.mxu1  ;;  %v3076_v30 = vrot.slane %v5776_v32, 2  ;;  %v3074_v26 = vrot.slane %v5793_v42, 2  ;;  %v2926_v38 = vrot.slane %v4424_v53, 1  ;;  %v2785_v10 = vadd.f32 %v2775_v33, %v2631_v62  ;;  %v3061_v19 = vpop.f32.mrf.mxu0  ;;  %v6109_v42 = vld [vmem:[#allocation19_spill] sm:$0xff] }
 0x309   : > { %v2786_v21 = vadd.f32 %v2774_v31, %v2632_v11  ;;  %v3075_v28 = vrot.slane %v5730_v44, 2  ;;  %v3073_v3 = vrot.slane %v5753_v36, 2  ;;  %v2936_v41 = vadd.f32 %v2931_v0, %v2782_v1  ;;  %v3808_v1 = vld [vmem:[%s6052_s5] ss:$0 sm:$0xff] }
 0x30a   : > { %v2933_v25 = vsel %vm1326_vm3, %v2919_v15, %v2920_v58  ;;  %v2935_v22 = vadd.f32 %v2932_v8, %v2781_v52  ;;  %v2925_v46 = vrot.slane %v5764_v56, 1  ;;  %v2930_v2 = vsel %vm1326_vm3, %v2922_v61, %v2923_v9 }
 0x30b   : > { %v2924_v48 = vrot.slane %v2907_v27, 1  ;;  %v3085_v44 = vsel %vm1635_vm4, %v3075_v28, %v3076_v30  ;;  %v3086_v12 = vsel %vm1635_vm4, %v3074_v26, %v3075_v28  ;;  %v3077_v51 = vrot.slane %v5829_v13, 2 }
 0x30c   : > { %v2927_v56 = vsel %vm1326_vm3, %v2925_v46, %v2926_v38  ;;  %v2934_v14 = vsel %vm1326_vm3, %v2926_v38, %v2919_v15  ;;  %v3080_v50 = vrot.slane %v4448_v60, 2  ;;  %v3090_v57 = vadd.f32 %v3085_v44, %v2936_v41 }
 0x30d   : > { %v2942_v49 = vadd.f32 %v2933_v25, %v2788_v45  ;;  %v3089_v5 = vadd.f32 %v3086_v12, %v2935_v22  ;;  %v2937_v7 = vadd.f32 %v2930_v2, %v2783_v63  ;;  %v3079_v24 = vrot.slane %v5812_v47, 2  ;;  %v6106_v25 = vld [vmem:[#allocation16_spill] sm:$0xff] }
 0x30e   : > { %v2940_v43 = vadd.f32 %v2927_v56, %v2786_v21  ;;  %v2929_v55 = vsel %vm1326_vm3, %v2923_v9, %v2924_v48  ;;  %v2941_v61 = vadd.f32 %v2934_v14, %v2787_v34  ;;  %v2928_v58 = vsel %vm1326_vm3, %v2924_v48, %v2925_v46  ;;  %v6107_v48 = vld [vmem:[#allocation18_spill] sm:$0xff] }
 0x30f   : > { %v3084_v63 = vsel %vm1635_vm4, %v3076_v30, %v3077_v51  ;;  %v3081_v47 = vsel %vm1635_vm4, %v3079_v24, %v3080_v50  ;;  %v3078_v27 = vrot.slane %v3061_v19, 2  ;;  %v3088_v54 = vsel %vm1635_vm4, %v3080_v50, %v3073_v3 }
 0x310   : > { %v3091_v11 = vadd.f32 %v3084_v63, %v2937_v7  ;;  %v2938_v34 = vadd.f32 %v2929_v55, %v2784_v40  ;;  %v2939_v13 = vadd.f32 %v2928_v58, %v2785_v10  ;;  %v3094_v8 = vadd.f32 %v3081_v47, %v2940_v43  ;;  %v6111_v55 = vld [vmem:[#allocation20_spill] sm:$0xff]  ;;  %v6112_v58 = vld [vmem:[#allocation23_spill] sm:$0xff] }
 0x311   : > { %v3095_v9 = vadd.f32 %v3088_v54, %v2941_v61  ;;  %v3083_v38 = vsel %vm1635_vm4, %v3077_v51, %v3078_v27  ;;  %v3082_v28 = vsel %vm1635_vm4, %v3078_v27, %v3079_v24  ;;  %v3087_v56 = vsel %vm1635_vm4, %v3073_v3, %v3074_v26  ;;  %v6110_v26 = vld [vmem:[#allocation21_spill] sm:$0xff] }
 0x312   : > { %v3092_v41 = vadd.f32 %v3083_v38, %v2938_v34  ;;  %v3093_v60 = vadd.f32 %v3082_v28, %v2939_v13  ;;  %v3096_v50 = vadd.f32 %v3087_v56, %v2942_v49  ;;  %v3317_v13 = vld [vmem:[%s6053_s6] sm:$0xff] }
 0x31b   : > { %v4467_v35 = vpop.f32.mrf.mxu1 }
 0x31c   : > { %v3229_v17 = vrot.slane %v4467_v35, 3 }
 0x31d   : > { %v5839_v4 = vpop.f32.mrf.mxu1 }
 0x31e   : > { %v3227_v40 = vrot.slane %v5839_v4, 3 }
 0x31f   : > { %v4468_v32 = vpop.f32.mrf.mxu1 }
 0x320   : > { %v3230_v18 = vrot.slane %v4468_v32, 3 }
 0x321   : > { %v3199_v16 = vpop.f32.mrf.mxu1 }
 0x322   : > { %v3239_v37 = vsel %vm1790_vm5, %v3229_v17, %v3230_v18  ;;  %v3228_v53 = vrot.slane %v3199_v16, 3 }
 0x323   : > { %v4471_v20 = vpop.f32.mrf.mxu1  ;;  %v3244_v52 = vadd.f32 %v3239_v37, %v3090_v57 }
 0x324   : > { %v3240_v6 = vsel %vm1790_vm5, %v3228_v53, %v3229_v17  ;;  %v3233_v35 = vrot.slane %v4471_v20, 3  ;;  %v3241_v16 = vsel %vm1790_vm5, %v3227_v40, %v3228_v53 }
 0x325   : > { %v3243_v59 = vadd.f32 %v3240_v6, %v3089_v5  ;;  %v3212_v39 = vpop.f32.mrf.mxu1  ;;  %v5883_v23 = vadd.f32 %v3808_v1, %v3244_v52  ;;  %v3250_v19 = vadd.f32 %v3241_v16, %v3096_v50 }
 0x326   : > { %v3231_v62 = vrot.slane %v3212_v39, 3  ;;  %v6113_v39 = vld [vmem:[#allocation22_spill] sm:$0xff] }
 0x327   : > { %v5879_v31 = vadd.f32 %v3808_v1, %v3243_v59  ;;  %v4472_v33 = vpop.f32.mrf.mxu1  ;;  %v3267_v17 = vmul.f32 %v5883_v23, %v6107_v48  ;;  %v5926_v49 = vadd.f32 %v3808_v1, %v3250_v19 }
 0x328   : > { %v3238_v45 = vsel %vm1790_vm5, %v3230_v18, %v3231_v62  ;;  %v3234_v0 = vrot.slane %v4472_v33, 3  ;;  %v6108_v18 = vld [vmem:[#allocation17_spill] sm:$0xff] }
 0x329   : > { %v3245_v15 = vadd.f32 %v3238_v45, %v3091_v11  ;;  %v3215_v30 = vpop.f32.mrf.mxu1  ;;  %v3266_v22 = vmul.f32 %v5879_v31, %v6106_v25  ;;  %v3273_v63 = vmul.f32 %v5926_v49, %v6113_v39 }
 0x32a   : > { %v3235_v21 = vsel %vm1790_vm5, %v3233_v35, %v3234_v0  ;;  %v3232_v10 = vrot.slane %v3215_v30, 3  ;;  %v3242_v32 = vsel %vm1790_vm5, %v3234_v0, %v3227_v40  ;;  %v3395_v0 = vld [vmem:[%s6055_s8] sm:$0xf] }
 0x32b   : > { %v5894_v46 = vadd.f32 %v3808_v1, %v3245_v15  ;;  %v3248_v12 = vadd.f32 %v3235_v21, %v3094_v8  ;;  %v3274_v37 = vadd.f32 %v3267_v17, %v3266_v22  ;;  %v3249_v57 = vadd.f32 %v3242_v32, %v3095_v9  ;;  %4481 = vmatpush3.msk.msra.mxu1 %vm3401_vm7, %v3395_v0 }
 0x32c   : > { %v3236_v4 = vsel %vm1790_vm5, %v3232_v10, %v3233_v35  ;;  %v3237_v2 = vsel %vm1790_vm5, %v3231_v62, %v3232_v10  ;;  %v3318_v62 = vld [vmem:[%s6053_s6 + $0x8] sm:$0xff] }
 0x32d   : > { %v3268_v44 = vmul.f32 %v5894_v46, %v6108_v18  ;;  %v3246_v51 = vadd.f32 %v3237_v2, %v3092_v41  ;;  %v3247_v14 = vadd.f32 %v3236_v4, %v3093_v60  ;;  %v5918_v24 = vadd.f32 %v3808_v1, %v3248_v12  ;;  %4474 = vmatpush3.msra.mxu0 %v3318_v62  ;;  %v3319_v2 = vld [vmem:[%s6054_s7] sm:$0x1] }
 0x32e   : > { %v5922_v43 = vadd.f32 %v3808_v1, %v3249_v57  ;;  %v3396_v12 = vld [vmem:[%s6056_s9] sm:$0x1] }
 0x32f   : > { %v5914_v5 = vadd.f32 %v3808_v1, %v3246_v51  ;;  %v5916_v7 = vadd.f32 %v3808_v1, %v3247_v14  ;;  %v3275_v20 = vadd.f32 %v3274_v37, %v3268_v44  ;;  %v3271_v6 = vmul.f32 %v5918_v24, %v6111_v55 }
 0x330   : > { %v3272_v52 = vmul.f32 %v5922_v43, %v6112_v58  ;;  %v6114_v1 = vmov 0.0  }
 0x331   : > { %v3269_v36 = vmul.f32 %v5914_v5, %v6109_v42  ;;  %v3270_v3 = vmul.f32 %v5916_v7, %v6110_v26  ;;  %4475 = vmatprep.subr.mxu0 %v6114_v1  ;;  %4477 = vmatprep.mubr.msk.f32.mxu0 %vm4887_vm6, %v6114_v1 }
 0x332   : > { %4476 = vmatpush3.msra.mxu0 %v3317_v13  ;;  %4482 = vmatprep.mubr.msk.f32.mxu1 %vm4887_vm6, %v6114_v1  ;;  %v4718_v13 = vld [vmem:[%s5084_s29] sm:$0xff] }
 0x333   : > { %v3276_v53 = vadd.f32 %v3275_v20, %v3269_v36 }
 0x335   : > { %v3277_v61 = vadd.f32 %v3276_v53, %v3270_v3 }
 0x337   : > { %v3278_v59 = vadd.f32 %v3277_v61, %v3271_v6 }
 0x339   : > { %v3279_v47 = vadd.f32 %v3278_v59, %v3272_v52  ;;  %v3518_v52 = vsub.s32 0, %v5260_v29 }
 0x33b   : > { %v3280_v27 = vadd.f32 %v3279_v47, %v3273_v63 }
 0x33d   : > { %v3281_v11 = vrot.slane %v3280_v27, 4 }
 0x33f   : > { %v3282_v54 = vadd.f32 %v3281_v11, %v3280_v27 }
 0x341   : > { %v3283_v34 = vrot.slane %v3282_v54, 2 }
 0x343   : > { %v3284_v33 = vadd.f32 %v3283_v34, %v3282_v54 }
 0x345   : > { %v3285_v35 = vrot.slane %v3284_v33, 1 }
 0x347   : > { %v3286_v45 = vadd.f32 %v3285_v35, %v3284_v33  ;;  %v4719_v35 = vld [vmem:[%s5084_s29 + $0x8] sm:$0xff] }
 0x349   : > { %3292 = vrot.lane.b32.xlu1 %v3286_v45, %s4885_s2  ;;  %3288 = vrot.lane.b32.xlu0 %v3286_v45, %s4886_s19 }
 0x34d   : > { %3300 = vrot.lane.b32.xlu1 %v3286_v45, %s4888_s24  ;;  %3296 = vrot.lane.b32.xlu0 %v3286_v45, %s4889_s25 }
 0x351   : > { %3308 = vrot.lane.b32.xlu1 %v3286_v45, %s4890_s22  ;;  %3304 = vrot.lane.b32.xlu0 %v3286_v45, %s4891_s11 }
 0x355   : > { %3312 = vrot.lane.b32.xlu0 %v3286_v45, %s4892_s26 }
 0x3bb   : > { %v3293_v8 = vpop.permute.xlu1 %3292  ;;  %v3289_v9 = vpop.permute.xlu0 %3288 }
 0x3bc   : > { %v3291_v15 = vadd.f32 %v3289_v9, %v3286_v45 }
 0x3be   : > { %v3295_v30 = vadd.f32 %v3293_v8, %v3291_v15  ;;  %v4724_v8 = vld [vmem:[%s5084_s29 + $0x30] sm:$0xff]  ;;  %v4725_v15 = vld [vmem:[%s5084_s29 + $0x38] sm:$0xff] }
 0x3bf   : > { %v3301_v38 = vpop.permute.xlu1 %3300  ;;  %v3297_v40 = vpop.permute.xlu0 %3296 }
 0x3c0   : > { %v3299_v21 = vadd.f32 %v3297_v40, %v3295_v30 }
 0x3c2   : > { %v3303_v10 = vadd.f32 %v3301_v38, %v3299_v21 }
 0x3c3   : > { %v3305_v28 = vpop.permute.xlu0 %3304  ;;  %v3309_v25 = vpop.permute.xlu1 %3308 }
 0x3c4   : > { %v3307_v41 = vadd.f32 %v3305_v28, %v3303_v10 }
 0x3c6   : > { %v3311_v22 = vadd.f32 %v3309_v25, %v3307_v41 }
 0x3c7   : > { %v3313_v60 = vpop.permute.xlu0 %3312 }
 0x3c8   : > { %v3315_v32 = vadd.f32 %v3313_v60, %v3311_v22 }
 0x3ca   : > { %v3316_v4 = vmul.f32 0.00390625, %v3315_v32 }
 0x3cc   : > { %4478 = vmatmul.mubr.msk.f32.vlgmr.msra.gmra.mxu0 %vm3320_vm8, %v3316_v4 }
 0x48c   : > { %v3390_v48 = vpop.f32.mrf.mxu0 }
 0x48d   : > { %v3391_v17 = vadd.f32 %v3390_v48, %v3319_v2 }
 0x48e   : > { %v4479_v18 = vpop.f32.mrf.mxu0 }
 0x48f   : > { %v3394_v44 = vmax.f32 %v3391_v17, 0.0 }
 0x491   : > { %4483 = vmatmul.mubr.msk.f32.vlgmr.msra.gmra.mxu1 %vm3397_vm9, %v3394_v44 }
 0x551   : > { %v3471_v51 = vpop.f32.mrf.mxu1 }
 0x552   : > { %v3472_v56 = vadd.f32 %v3471_v51, %v3396_v12 }
 0x553   : > { %v4484_v16 = vpop.f32.mrf.mxu1 }
 0x554   : > { %v3812_v14 = vmul.f32 -1.442695, %v3472_v56 }
 0x556   : > { %4714 = vpow2.f32 %v3812_v14 }
 0x563   : > { %v4715_v50 = vpop.eup %4714 }
 0x564   : > { %v3478_v37 = vadd.f32 1.0, %v4715_v50 }
 0x566   : > { %4716 = vrcp.f32 %v3478_v37 }
 0x573   : > { %v4717_v57 = vpop.eup %4716 }
 0x574   : > { %3485 = vrot.lane.b32.xlu0 %v4717_v57, %s4890_s22  ;;  %3482 = vrot.lane.b32.xlu1 %v4717_v57, %s4892_s26 }
 0x578   : > { %3491 = vrot.lane.b32.xlu0 %v4717_v57, %s4888_s24  ;;  %3488 = vrot.lane.b32.xlu1 %v4717_v57, %s4891_s11  ;;  %s4893_s11 = smov [#allocation8]  }
 0x579   : > { %s4810_s26 = sshll.u32 %s4893_s11, 4  ;;  %s4811_s26 = int_to_ptr.vmem [resolvable:$false] %s4810_s26 }
 0x57c   : > { %3497 = vrot.lane.b32.xlu0 %v4717_v57, %s4885_s2  ;;  %3494 = vrot.lane.b32.xlu1 %v4717_v57, %s4889_s25  ;;  %s3819_s2 = sshll.u32 %s4972_s17, 10  ;;  %s3545_s25 = scalar_lea.sflag [#allocation4], %s5078_s30 }
 0x57d   : > { %s5990_s24 = scalar_lea.hbm %s6057_s10, %s3819_s2 }
 0x580   : > { %3500 = vrot.lane.b32.xlu1 %v4717_v57, %s4886_s19  ;;  %s5972_s19 = scalar_lea.vmem [#allocation8], %s3659_s15 }
 0x581   : > { %s3558_s18 = sshll.u32 %s5972_s19, 4  ;;  %s5992_s18 = int_to_ptr.vmem [resolvable:$true] %s3558_s18 }
 0x582   : > { %s4806_s22 = scalar_lea.vmem %s5992_s18, 1024  ;;  %p4813_p6 = scmp.lt.s32.totalorder %s5992_s18, %s4811_s26 }
 0x583   : > { %p4807_p11 = scmp.ne.s32.totalorder %s5992_s18, %s4806_s22 }
 0x585   : > { %p4808_p1 = pnand %p4807_p11, %p6115_p10 }
 0x587   : > { %p4809_p2 = pneg %p4808_p1 }
 0x5e6   : > { %v3486_v19 = vpop.permute.xlu0 %3485  ;;  %v3483_v20 = vpop.permute.xlu1 %3482 }
 0x5e7   : > { %v3503_v42 = vsel %vm3320_vm8, %v4717_v57, %v3483_v20 }
 0x5e8   : > { %v3505_v26 = vsel %vm3504_vm10, %v3503_v42, %v3486_v19 }
 0x5ea   : > { %v3492_v36 = vpop.permute.xlu0 %3491  ;;  %v3489_v3 = vpop.permute.xlu1 %3488 }
 0x5eb   : > { %v3507_v53 = vsel %vm3506_vm11, %v3505_v26, %v3489_v3 }
 0x5ec   : > { %v3509_v55 = vsel %vm3508_vm12, %v3507_v53, %v3492_v36 }
 0x5ee   : > { %v3495_v6 = vpop.permute.xlu1 %3494  ;;  %v3498_v61 = vpop.permute.xlu0 %3497 }
 0x5ef   : > { %v3511_v58 = vsel %vm3510_vm13, %v3509_v55, %v3495_v6 }
 0x5f0   : > { %v3513_v59 = vsel %vm3512_vm14, %v3511_v58, %v3498_v61 }
 0x5f2   : > { %v3501_v39 = vpop.permute.xlu1 %3500 }
 0x5f3   : > { %v3515_v63 = vsel %vm3514_vm15, %v3513_v59, %v3501_v39 }
 0x5f4   : > { %v3519_v47 = vrot.slane %v3515_v63, %v3518_v52 }
 0x5f6   : > { %v3520_v27 = vmul.f32 %v3519_v47, %v5879_v31  ;;  %v3521_v62 = vmul.f32 %v3519_v47, %v5883_v23  ;;  %v3522_v29 = vmul.f32 %v3519_v47, %v5894_v46  ;;  %v3523_v11 = vmul.f32 %v3519_v47, %v5914_v5  ;;  %v4720_v46 = vld [vmem:[%s5084_s29 + $0x10] sm:$0xff] }
 0x5f7   : > { %v3524_v1 = vmul.f32 %v3519_v47, %v5916_v7  ;;  %v3525_v54 = vmul.f32 %v3519_v47, %v5918_v24  ;;  %v3526_v34 = vmul.f32 %v3519_v47, %v5922_v43  ;;  %v3527_v33 = vmul.f32 %v3519_v47, %v5926_v49  ;;  %v4721_v7 = vld [vmem:[%s5084_s29 + $0x18] sm:$0xff]  ;;  %v4722_v24 = vld [vmem:[%s5084_s29 + $0x20] sm:$0xff]  ;;  %v4723_v49 = vld [vmem:[%s5084_s29 + $0x28] sm:$0xff]  ;;  %s4812_s29 = scalar_lea.vmem %s4811_s26, 2048 }
 0x5f8   : > { %v3528_v31 = vadd.f32 %v4718_v13, %v3520_v27  ;;  %v3529_v23 = vadd.f32 %v4719_v35, %v3521_v62  ;;  %v3530_v5 = vadd.f32 %v4720_v46, %v3522_v29  ;;  %v3531_v45 = vadd.f32 %v4721_v7, %v3523_v11  ;;  %p4814_p12 = scmp.lt.s32.totalorder %s4812_s29, %s4806_s22 }
 0x5f9   : > { %v3532_v43 = vadd.f32 %v4722_v24, %v3524_v1  ;;  %v3533_v0 = vadd.f32 %v4723_v49, %v3525_v54  ;;  %v3534_v9 = vadd.f32 %v4724_v8, %v3526_v34  ;;  %v3535_v30 = vadd.f32 %v4725_v15, %v3527_v33 }
 0x5fa   : > { %3536 = vst [vmem:[%s5972_s19] sm:$0xff] %v3528_v31  ;;  %3537 = vst [vmem:[%s5972_s19 + $0x8] sm:$0xff] %v3529_v23  ;;  %p4815_p7 = por %p4814_p12, %p4813_p6 }
 0x5fb   : > { %3538 = vst [vmem:[%s5972_s19 + $0x10] sm:$0xff] %v3530_v5  ;;  %3539 = vst [vmem:[%s5972_s19 + $0x18] sm:$0xff] %v3531_v45 }
 0x5fc   : > { %3540 = vst [vmem:[%s5972_s19 + $0x20] sm:$0xff] %v3532_v43  ;;  %3541 = vst [vmem:[%s5972_s19 + $0x28] sm:$0xff] %v3533_v0  ;;  %p4816_p9 = pnand %p4815_p7, %p4809_p2 }
 0x5fd   : > { %3542 = vst [vmem:[%s5972_s19 + $0x30] sm:$0xff] %v3534_v9  ;;  %3543 = vst [vmem:[%s5972_s19 + $0x38] sm:$0xff] %v3535_v30 }
 0x5fe   : > { %4819 = shalt.err (!%p4816_p9)
}
 0x5ff   : > { %s4820_s4 = scalar_lea.hbm %s5990_s24, 1024  ;;  %s4824_s21 = scalar_lea.hbm %s6057_s10, 2048 }
 0x600   : > { %p4821_p13 = scmp.ne.s32.totalorder %s5990_s24, %s4820_s4  ;;  %p4825_p4 = scmp.lt.s32.totalorder %s5990_s24, %s6057_s10 }
 0x601   : > { %p4826_p8 = scmp.lt.s32.totalorder %s4824_s21, %s4820_s4 }
 0x602   : > { %p4822_p5 = pnand %p4821_p13, %p6115_p10 }
 0x603   : > { %p4827_p3 = por %p4826_p8, %p4825_p4 }
 0x604   : > { %p4823_p0 = pneg %p4822_p5 }
 0x606   : > { %p4828_p11 = pnand %p4827_p3, %p4823_p0 }
 0x608   : > { %4831 = shalt.err (!%p4828_p11)
}
 0x609   : > { %s4894_s17 = smov 128   ;;  %s4895_s15 = smov 8  }
 0x60a   : > { %4495 = dma.vmem_to_hbm [thread:$0]  (%p6115_p10), %s5992_s18, 1024, %s5990_s24, %s3545_s25, %s4894_s17, %s4894_s17, %s4895_s15  }
 0x60b PF: > { %s3573_s22 = sand.u32 1, %s4862_s13   ;;  %p6116_p1 = scmp.ne.s32.totalorder %s6079_s20, 0 }
 0x60c   : > { %p6117_p2 = scmp.ge.s32.totalorder %s4874_s16, 2  ;;  %s3574_s11 = scalar_lea.sflag [#allocation4], %s3573_s22 }
 0x60e   : > { %p4509_p6 = pnand %p6117_p2, %p6116_p1 }
 0x610   : > { %p4510_p12 = pneg %p4509_p6 }
 0x612   : > { %4857 = dma.done.wait (%p4510_p12), %s3574_s11, 1024  }
 0x613   : > { %4859 = vsyncadd (%p4510_p12), %s3574_s11, 4294966272  ;;  %s6118_s26 = sld [smem:[#allocation12_spill]]  ;;  %p24_p7 = scmp.ge.s32.totalorder %s5023_s23, 4  }
 0x614   : > { %s6119_s15 = sld [smem:[#allocation13_spill]]  ;;  %s6120_s13 = smov %s4866_s14 }
 0x615   : > { %s6122_s16 = smov %s5023_s23  ;;  %26 = sbr.rel (!%p24_p7) target bundleno = 9 (0x9), region = 129 }
 0x619   : > { %s6121_s14 = smov %s6118_s26 }
 0x61a   :  { %3579 = vsyncpa [#allocation3], 1 }
 0x61b   :  { %3581 = vsyncpa [#allocation3 + $0x1], 1 }
 0x61c   :  { %3582 = vsyncpa [#allocation6], 1 }
 0x61d   :  { %3583 = vsyncpa [#allocation4], 1 }
 0x61e   :  { %3585 = vsyncpa [#allocation4 + $0x1], 1 }

</bundles_post_ra>
